<compile_context>
chip_gen: v5e
topology: v5e:2x2
jax: 0.10.0
libtpu: 0.0.40
codegen_flags: <defaults>
</compile_context>

<pallas_src>
import functools

import jax
import jax.numpy as jnp
from jax.experimental import pallas as pl
from jax.experimental.pallas import tpu as pltpu

EPS = 1e-5


def _round_up(x, m):
    return ((x + m - 1) // m) * m


def _pad2(a, rows, cols):
    return jnp.pad(a, ((0, rows - a.shape[0]), (0, cols - a.shape[1])))


# ---------------------------------------------------------------------------
# Fused kernel: adjacency aggregation + root add + BatchNorm + ReLU + the
# bottleneck partial reduction, for both graphs, tiled over the adjacency
# contraction (source-node) axis.
#
# grid = (graph g, k)   g: "parallel" (v7x megacore), k: "arbitrary" (reduction)
# ---------------------------------------------------------------------------
def _congfu_fused_kernel(use_relu, quantized, eps,
                         nvalid_ref, scale_ref,            # scalar prefetch (SMEM)
                         adj_ref, msg_ref, root_ref, assign_t_ref,
                         w_nbr_ref, gamma_ref, beta_ref,
                         xout_ref, ctxpart_ref):
    g = pl.program_id(0)
    k = pl.program_id(1)
    nk = pl.num_programs(1)
    n_pad, out_p = xout_ref.shape
    tk = adj_ref.shape[1]
    cdt = msg_ref.dtype                                   # compute dtype (bf16 / f32)

    @pl.when(k == 0)
    def _init():
        # xout_ref is the accumulator: f32 output block, constant index over k.
        xout_ref[...] = jnp.zeros_like(xout_ref)

    row0 = pl.multiple_of(k * tk, tk)

    # Source tiles entirely past the true node count contribute exactly zero
    # (padded msg/root rows and adjacency columns are zero) -> skip MXU work.
    @pl.when(row0 < nvalid_ref[g])
    def _accumulate():
        msg = msg_ref[...]
        adj = adj_ref[...]
        if quantized:
            # Fold the per-graph int8 dequant scale into the small msg tile and
            # widen the int8 adjacency tile on the VPU (slack in a mem-bound loop).
            msg = (msg.astype(jnp.float32) * scale_ref[g]).astype(cdt)
            adj = adj.astype(jnp.float32).astype(cdt)
        # weighted-adjacency aggregation: all destination rows x this source tile
        xout_ref[...] += jnp.dot(adj, msg, preferred_element_type=jnp.float32)
        # root (self) contribution lands exactly on this tile's own rows
        xout_ref[pl.ds(row0, tk), :] += root_ref[...].astype(jnp.float32)

    # ---- finalize: BatchNorm + ReLU (in place) + bottleneck partial ----------
    @pl.when(k == nk - 1)
    def _finalize():
        # INVARIANT: accumulator rows >= nvalid are exactly zero (see header),
        # which makes the padded-row variance correction below exact.
        h = xout_ref[...]                                  # (n_pad, out_p)
        cnt = nvalid_ref[g].astype(jnp.float32)
        inv_n = 1.0 / cnt
        mean = jnp.sum(h, axis=0, keepdims=True) * inv_n
        d = h - mean
        var = (jnp.sum(d * d, axis=0, keepdims=True)
               - (float(n_pad) - cnt) * (mean * mean)) * inv_n
        var = jnp.maximum(var, 0.0)
        hn = d * jax.lax.rsqrt(var + eps) * gamma_ref[...] + beta_ref[...]
        if use_relu:
            hn = jnp.maximum(hn, 0.0)
        xout_ref[...] = hn                                 # lane-dense f32 store

        # Bottleneck partial: assign.T @ (x_new @ W_nbr).  assign is stored
        # pre-transposed (b_p, n_pad), so this is a lane-dense matmul with no
        # relayout; padded node columns are zero, so padded rows drop out.
        xw = jnp.dot(hn.astype(cdt), w_nbr_ref[...],
                     preferred_element_type=jnp.float32)   # (n_pad, ctx_p)
        ctxpart_ref[...] = jnp.dot(assign_t_ref[...], xw.astype(cdt),
                                   preferred_element_type=jnp.float32)


# ---------------------------------------------------------------------------
# Full CongFuLayer forward.
# ---------------------------------------------------------------------------
def congfu_layer(graph_a, graph_b, context, params, *, last_layer=False,
                 compute_dtype=jnp.bfloat16, quantize_adj=True, tk=256):
    use_relu = not last_layer
    f32 = jnp.float32
    cdt = compute_dtype

    b, ctx_dim = context.shape
    n_a, gin = graph_a["x"].shape
    n_b = graph_b["x"].shape[0]
    del gin
    out_dim = params["w_ctx"].shape[1]

    # ---- lane / sublane padding --------------------------------------------
    out_p = _round_up(out_dim, 128)
    ctx_p = _round_up(ctx_dim, 128)
    b_p = _round_up(b, 8)

    n_max = max(n_a, n_b)
    tk_eff = min(_round_up(tk, 128), _round_up(n_max, 128))   # lane-dense K tile
    n_pad = _round_up(n_max, tk_eff)                           # multiple of tk and 128
    num_k = n_pad // tk_eff

    # ---- tiny projections hoisted to XLA (f32), streamed as cdt tiles -------
    # repeat_interleave(context, ptr.diff()) @ W_ctx + b_ctx == assign @ ctx_proj
    ctx_proj = context @ params["w_ctx"] + params["b_ctx"]       # [B, OUT]

    def _proj(graph):
        h0 = graph["assign"] @ ctx_proj + graph["x"] @ params["w_x"]
        return h0 @ params["w_root"], h0 @ params["w_msg"]

    root_a, msg_a = _proj(graph_a)
    root_b, msg_b = _proj(graph_b)
    root_s = jnp.stack([_pad2(root_a, n_pad, out_p),
                        _pad2(root_b, n_pad, out_p)]).astype(cdt)
    msg_s = jnp.stack([_pad2(msg_a, n_pad, out_p),
                       _pad2(msg_b, n_pad, out_p)]).astype(cdt)

    # ---- adjacency: dominant HBM stream; optionally int8 per-graph scale ----
    adj_f = jnp.stack([
        jnp.pad(graph_a["adj"], ((0, n_pad - n_a), (0, n_pad - n_a))),
        jnp.pad(graph_b["adj"], ((0, n_pad - n_b), (0, n_pad - n_b)))]).astype(f32)
    if quantize_adj:
        scales = jnp.maximum(jnp.max(jnp.abs(adj_f), axis=(1, 2)), 1e-12) / 127.0
        adj_s = jnp.clip(jnp.round(adj_f / scales[:, None, None]),
                         -127.0, 127.0).astype(jnp.int8)
    else:
        scales = jnp.ones((2,), f32)
        adj_s = adj_f.astype(cdt)

    # pre-transposed assign: (2, b_p, n_pad) -> node axis on lanes (lane-dense)
    assign_t_s = jnp.stack([_pad2(graph_a["assign"].T, b_p, n_pad),
                            _pad2(graph_b["assign"].T, b_p, n_pad)]).astype(cdt)
    counts = jnp.array([n_a, n_b], jnp.int32)

    w_nbr_p = _pad2(params["w_nbr"], out_p, ctx_p).astype(cdt)
    gamma_p = _pad2(params["gamma"], 1, out_p).astype(f32)
    beta_p = _pad2(params["beta"], 1, out_p).astype(f32)

    kernel = functools.partial(_congfu_fused_kernel, use_relu, bool(quantize_adj), EPS)

    grid_spec = pltpu.PrefetchScalarGridSpec(
        num_scalar_prefetch=2,                       # true node counts + adj scales
        grid=(2, num_k),
        in_specs=[
            pl.BlockSpec((None, n_pad, tk_eff), lambda g, k, nv, sc: (g, 0, k)),  # adj (tiled)
            pl.BlockSpec((None, tk_eff, out_p), lambda g, k, nv, sc: (g, k, 0)),  # msg (tiled)
            pl.BlockSpec((None, tk_eff, out_p), lambda g, k, nv, sc: (g, k, 0)),  # root (tiled)
            pl.BlockSpec((None, b_p, n_pad),    lambda g, k, nv, sc: (g, 0, 0)),  # assign^T (resident)
            pl.BlockSpec((out_p, ctx_p),        lambda g, k, nv, sc: (0, 0)),     # W_nbr
            pl.BlockSpec((1, out_p),            lambda g, k, nv, sc: (0, 0)),     # gamma
            pl.BlockSpec((1, out_p),            lambda g, k, nv, sc: (0, 0)),     # beta
        ],
        out_specs=[
            pl.BlockSpec((None, n_pad, out_p), lambda g, k, nv, sc: (g, 0, 0)),   # x_new (acc)
            pl.BlockSpec((None, b_p, ctx_p),   lambda g, k, nv, sc: (g, 0, 0)),   # bottleneck partial
        ],
    )

    # ---- VMEM budget: derived from the resident footprint, capped per-device --
    adj_item = jnp.dtype(adj_s.dtype).itemsize
    c_item = jnp.dtype(cdt).itemsize
    resident = (2 * n_pad * tk_eff * adj_item              # adj double buffer
                + 2 * 2 * tk_eff * out_p * c_item          # msg + root double buffers
                + b_p * n_pad * c_item                     # assign^T
                + out_p * ctx_p * c_item + 2 * out_p * 4   # W_nbr, gamma, beta
                + n_pad * out_p * 4 + b_p * ctx_p * 4)     # resident outputs
    try:
        cap = int(getattr(pltpu.get_tpu_info(), "vmem_capacity_bytes",
                          64 * 1024 * 1024))
    except Exception:
        cap = 64 * 1024 * 1024                             # conservative (v7x per-TC)
    vmem_limit = int(min(max(2 * resident, 32 * 1024 * 1024), int(0.9 * cap)))

    cost = pl.CostEstimate(
        flops=int(2 * (2 * n_pad * n_pad * out_p
                       + 2 * n_pad * out_p * ctx_p
                       + 2 * b_p * n_pad * ctx_p)),
        transcendentals=int(2 * out_p),
        bytes_accessed=int(adj_s.size * adj_item
                           + (msg_s.size + root_s.size + assign_t_s.size
                              + w_nbr_p.size) * c_item
                           + 4 * (gamma_p.size + beta_p.size
                                  + 2 * n_pad * out_p + 2 * b_p * ctx_p)),
    )

    x_new, ctx_part = pl.pallas_call(
        kernel,
        out_shape=(jax.ShapeDtypeStruct((2, n_pad, out_p), f32),
                   jax.ShapeDtypeStruct((2, b_p, ctx_p), f32)),
        grid_spec=grid_spec,
        compiler_params=pltpu.CompilerParams(
            dimension_semantics=("parallel", "arbitrary"),   # graph axis -> 2 TCs on v7x
            vmem_limit_bytes=vmem_limit),
        cost_estimate=cost,
    )(counts, scales, adj_s, msg_s, root_s, assign_t_s, w_nbr_p, gamma_p, beta_p)

    xa = x_new[0, :n_a, :out_dim]
    xb = x_new[1, :n_b, :out_dim]
    # tiny context-only epilogue: both graphs share ctx @ W_self -> factor 2
    ctx_new = (2.0 * context @ params["w_self"]
               + ctx_part[0, :b, :ctx_dim] + ctx_part[1, :b, :ctx_dim])
    return xa, xb, ctx_new


# ---------------------------------------------------------------------------
# Pure-JAX (f32) reference for verification.
# ---------------------------------------------------------------------------
def _ref_graph(context, assign, x, adj, p, use_relu):
    h0 = (assign @ context) @ p["w_ctx"] + p["b_ctx"] + x @ p["w_x"]
    h = h0 @ p["w_root"] + adj @ (h0 @ p["w_msg"])
    mean = jnp.mean(h, axis=0, keepdims=True)
    var = jnp.mean((h - mean) ** 2, axis=0, keepdims=True)
    h = (h - mean) / jnp.sqrt(var + EPS) * p["gamma"] + p["beta"]
    return jnp.maximum(h, 0.0) if use_relu else h


def _ref_layer(ga, gb, context, p, last_layer=False):
    use_relu = not last_layer
    xa = _ref_graph(context, ga["assign"], ga["x"], ga["adj"], p, use_relu)
    xb = _ref_graph(context, gb["assign"], gb["x"], gb["adj"], p, use_relu)
    ctx = (2.0 * context @ p["w_self"]
           + ga["bip"] @ (xa @ p["w_nbr"])
           + gb["bip"] @ (xb @ p["w_nbr"]))
    return xa, xb, ctx


# ---------------------------------------------------------------------------
# Example construction (vectorized; directed ring per sub-graph, weighted edges).
# ---------------------------------------------------------------------------
def _make_graph(key, n_per_graph, b, feat_dim):
    k1, k2 = jax.random.split(key)
    n = n_per_graph * b
    x = jax.random.normal(k1, (n, feat_dim), jnp.float32)
    graph_id = jnp.repeat(jnp.arange(b), n_per_graph)
    assign = jax.nn.one_hot(graph_id, b, dtype=jnp.float32)          # ptr-based membership
    w = jax.random.uniform(k2, (n,), jnp.float32) + 0.5
    src = jnp.arange(n)
    local = src % n_per_graph
    dst = graph_id * n_per_graph + (local + 1) % n_per_graph
    adj = jnp.zeros((n, n), jnp.float32).at[dst, src].set(w)         # [dst, src] weighted
    bip = assign.T                                                    # context <- node edges
    return {"x": x, "assign": assign, "adj": adj, "bip": bip}


if __name__ == "__main__":
    B, CTX, GIN, OUT = 2, 16, 8, 32
    NP_A, NP_B = 70, 60          # ragged: graph A = 140 nodes, graph B = 120 nodes

    key = jax.random.PRNGKey(0)
    ks = jax.random.split(key, 10)

    context = jax.random.normal(ks[0], (B, CTX), jnp.float32)
    graph_a = _make_graph(ks[1], NP_A, B, GIN)
    graph_b = _make_graph(ks[2], NP_B, B, GIN)

    params = {
        "w_ctx":  0.1 * jax.random.normal(ks[3], (CTX, OUT), jnp.float32),
        "b_ctx":  0.1 * jax.random.normal(ks[4], (1, OUT), jnp.float32),
        "w_x":    0.1 * jax.random.normal(ks[5], (GIN, OUT), jnp.float32),
        "w_root": 0.1 * jax.random.normal(ks[6], (OUT, OUT), jnp.float32),
        "w_msg":  0.1 * jax.random.normal(ks[7], (OUT, OUT), jnp.float32),
        "gamma":  jnp.ones((1, OUT), jnp.float32),
        "beta":   jnp.zeros((1, OUT), jnp.float32),
        "w_self": 0.1 * jax.random.normal(ks[8], (CTX, CTX), jnp.float32),
        "w_nbr":  0.1 * jax.random.normal(ks[9], (OUT, CTX), jnp.float32),
    }

    xa_r, xb_r, ctx_r = _ref_layer(graph_a, graph_b, context, params, last_layer=False)

    # Perf-default path: bf16 compute, int8-quantized adjacency (dominant stream).
    xa, xb, ctx = congfu_layer(graph_a, graph_b, context, params, last_layer=False)
    jax.block_until_ready((xa, xb, ctx))
    assert xa.shape == xa_r.shape and xb.shape == xb_r.shape and ctx.shape == ctx_r.shape
    assert jnp.allclose(xa, xa_r, atol=1e-1, rtol=1e-1)
    assert jnp.allclose(xb, xb_r, atol=1e-1, rtol=1e-1)
    assert jnp.allclose(ctx, ctx_r, atol=2.5e-1, rtol=1e-1)

    # f32 compute, unquantized adjacency: tight numerical check of the fused structure.
    xa32, xb32, ctx32 = congfu_layer(graph_a, graph_b, context, params,
                                     last_layer=False, compute_dtype=jnp.float32,
                                     quantize_adj=False)
    jax.block_until_ready((xa32, xb32, ctx32))
    assert jnp.allclose(xa32, xa_r, atol=2e-3, rtol=2e-3)
    assert jnp.allclose(xb32, xb_r, atol=2e-3, rtol=2e-3)
    assert jnp.allclose(ctx32, ctx_r, atol=2e-3, rtol=2e-3)

    print("KERNEL_OK")
</pallas_src>

<mosaic_0001>
module attributes {stable_mosaic.version = 11 : i64} {
  func.func @_congfu_fused_kernel(%arg0: i32, %arg1: i32, %arg2: memref<2xi32, #tpu.memory_space<smem>>, %arg3: memref<2xf32, #tpu.memory_space<smem>>, %arg4: memref<1x256x256xi8, #tpu.memory_space<vmem>>, %arg5: memref<1x256x128xbf16, #tpu.memory_space<vmem>>, %arg6: memref<1x256x128xbf16, #tpu.memory_space<vmem>>, %arg7: memref<1x8x256xbf16, #tpu.memory_space<vmem>>, %arg8: memref<128x128xbf16, #tpu.memory_space<vmem>>, %arg9: memref<1x128xf32, #tpu.memory_space<vmem>>, %arg10: memref<1x128xf32, #tpu.memory_space<vmem>>, %arg11: memref<1x256x128xf32, #tpu.memory_space<vmem>>, %arg12: memref<1x8x128xf32, #tpu.memory_space<vmem>>) attributes {dimension_semantics = [#tpu.dimension_semantics<parallel>, #tpu.dimension_semantics<arbitrary>], iteration_bounds = array<i64: 2, 1>, scalar_prefetch = 2 : i64, scratch_operands = 0 : i64, tpu.core_type = #tpu.core_type<tc>, window_params = [{transform_indices = @transform_0, window_bounds = array<i64: 1, 256, 256>}, {transform_indices = @transform_1, window_bounds = array<i64: 1, 256, 128>}, {transform_indices = @transform_2, window_bounds = array<i64: 1, 256, 128>}, {transform_indices = @transform_3, window_bounds = array<i64: 1, 8, 256>}, {pipeline_mode = #tpu.pipeline_mode<synchronous>, transform_indices = @transform_4, window_bounds = array<i64: 128, 128>}, {pipeline_mode = #tpu.pipeline_mode<synchronous>, transform_indices = @transform_5, window_bounds = array<i64: 1, 128>}, {pipeline_mode = #tpu.pipeline_mode<synchronous>, transform_indices = @transform_6, window_bounds = array<i64: 1, 128>}, {transform_indices = @transform_7, window_bounds = array<i64: 1, 256, 128>}, {transform_indices = @transform_8, window_bounds = array<i64: 1, 8, 128>}]} {
    %c0_i32 = arith.constant 0 : i32
    %0 = arith.cmpi eq, %arg1, %c0_i32 : i32
    %1 = arith.extui %0 : i1 to i32
    %c0_i32_0 = arith.constant 0 : i32
    %2 = arith.cmpi ne, %1, %c0_i32_0 : i32
    scf.if %2 {
      %cst = arith.constant 0.000000e+00 : f32
      %13 = vector.broadcast %cst : f32 to vector<256x128xf32>
      %c0 = arith.constant 0 : index
      %c0_4 = arith.constant 0 : index
      %c0_5 = arith.constant 0 : index
      %14 = vector.load %arg11[%c0, %c0_4, %c0_5] : memref<1x256x128xf32, #tpu.memory_space<vmem>>, vector<1x256x128xf32>
      %15 = vector.shape_cast %14 : vector<1x256x128xf32> to vector<256x128xf32>
      %16 = vector.shape_cast %13 : vector<256x128xf32> to vector<1x256x128xf32>
      tpu.vector_store %arg11[%c0, %c0_4, %c0_5], %16 {strides = array<i32>} : memref<1x256x128xf32, #tpu.memory_space<vmem>>, vector<1x256x128xf32>,
    } else {
    }
    %c256_i32 = arith.constant 256 : i32
    %3 = arith.muli %arg1, %c256_i32 : i32
    %4 = tpu.assume_multiple %3, 256 : i32
    %5 = arith.index_cast %arg0 : i32 to index
    %6 = memref.load %arg2[%5] : memref<2xi32, #tpu.memory_space<smem>>
    %7 = arith.cmpi slt, %4, %6 : i32
    %8 = arith.extui %7 : i1 to i32
    %c0_i32_1 = arith.constant 0 : i32
    %9 = arith.cmpi ne, %8, %c0_i32_1 : i32
    scf.if %9 {
      %c0 = arith.constant 0 : index
      %c0_4 = arith.constant 0 : index
      %c0_5 = arith.constant 0 : index
      %13 = vector.load %arg5[%c0, %c0_4, %c0_5] : memref<1x256x128xbf16, #tpu.memory_space<vmem>>, vector<1x256x128xbf16>
      %14 = vector.shape_cast %13 : vector<1x256x128xbf16> to vector<256x128xbf16>
      %c0_6 = arith.constant 0 : index
      %c0_7 = arith.constant 0 : index
      %c0_8 = arith.constant 0 : index
      %15 = vector.load %arg4[%c0_6, %c0_7, %c0_8] : memref<1x256x256xi8, #tpu.memory_space<vmem>>, vector<1x256x256xi8>
      %16 = vector.shape_cast %15 : vector<1x256x256xi8> to vector<256x256xi8>
      %17 = arith.extf %14 : vector<256x128xbf16> to vector<256x128xf32>
      %18 = arith.index_cast %arg0 : i32 to index
      %19 = memref.load %arg3[%18] : memref<2xf32, #tpu.memory_space<smem>>
      %20 = vector.broadcast %19 : f32 to vector<256x128xf32>
      %21 = arith.mulf %17, %20 : vector<256x128xf32>
      %22 = arith.truncf %21 : vector<256x128xf32> to vector<256x128xbf16>
      %23 = arith.sitofp %16 : vector<256x256xi8> to vector<256x256xf32>
      %24 = arith.truncf %23 : vector<256x256xf32> to vector<256x256xbf16>
      %c0_9 = arith.constant 0 : index
      %c0_10 = arith.constant 0 : index
      %c0_11 = arith.constant 0 : index
      %25 = vector.load %arg11[%c0_9, %c0_10, %c0_11] : memref<1x256x128xf32, #tpu.memory_space<vmem>>, vector<1x256x128xf32>
      %26 = vector.shape_cast %25 : vector<1x256x128xf32> to vector<256x128xf32>
      %cst = arith.constant dense<0.000000e+00> : vector<256x128xf32>
      %27 = tpu.matmul %24, %22, %cst {dimension_numbers = #tpu.dot_dimension_numbers<[1], [0], [0], [1], [0, 0, 1, 1], [], []>} : vector<256x256xbf16>, vector<256x128xbf16>, vector<256x128xf32> -> vector<256x128xf32>
      %28 = arith.addf %26, %27 : vector<256x128xf32>
      %c0_12 = arith.constant 0 : index
      %c0_13 = arith.constant 0 : index
      %c0_14 = arith.constant 0 : index
      %29 = vector.load %arg11[%c0_12, %c0_13, %c0_14] : memref<1x256x128xf32, #tpu.memory_space<vmem>>, vector<1x256x128xf32>
      %30 = vector.shape_cast %29 : vector<1x256x128xf32> to vector<256x128xf32>
      %31 = vector.shape_cast %28 : vector<256x128xf32> to vector<1x256x128xf32>
      tpu.vector_store %arg11[%c0_12, %c0_13, %c0_14], %31 {strides = array<i32>} : memref<1x256x128xf32, #tpu.memory_space<vmem>>, vector<1x256x128xf32>,
      %c0_15 = arith.constant 0 : index
      %32 = arith.index_cast %4 : i32 to index
      %c0_16 = arith.constant 0 : index
      %33 = vector.load %arg11[%c0_15, %32, %c0_16] : memref<1x256x128xf32, #tpu.memory_space<vmem>>, vector<1x256x128xf32>
      %34 = vector.shape_cast %33 : vector<1x256x128xf32> to vector<256x128xf32>
      %c0_17 = arith.constant 0 : index
      %c0_18 = arith.constant 0 : index
      %c0_19 = arith.constant 0 : index
      %35 = vector.load %arg6[%c0_17, %c0_18, %c0_19] : memref<1x256x128xbf16, #tpu.memory_space<vmem>>, vector<1x256x128xbf16>
      %36 = vector.shape_cast %35 : vector<1x256x128xbf16> to vector<256x128xbf16>
      %37 = arith.extf %36 : vector<256x128xbf16> to vector<256x128xf32>
      %38 = arith.addf %34, %37 : vector<256x128xf32>
      %c0_20 = arith.constant 0 : index
      %39 = arith.index_cast %4 : i32 to index
      %c0_21 = arith.constant 0 : index
      %40 = vector.load %arg11[%c0_20, %39, %c0_21] : memref<1x256x128xf32, #tpu.memory_space<vmem>>, vector<1x256x128xf32>
      %41 = vector.shape_cast %40 : vector<1x256x128xf32> to vector<256x128xf32>
      %42 = vector.shape_cast %38 : vector<256x128xf32> to vector<1x256x128xf32>
      tpu.vector_store %arg11[%c0_20, %39, %c0_21], %42 {strides = array<i32>} : memref<1x256x128xf32, #tpu.memory_space<vmem>>, vector<1x256x128xf32>,
    } else {
    }
    %c0_i32_2 = arith.constant 0 : i32
    %10 = arith.cmpi eq, %arg1, %c0_i32_2 : i32
    %11 = arith.extui %10 : i1 to i32
    %c0_i32_3 = arith.constant 0 : i32
    %12 = arith.cmpi ne, %11, %c0_i32_3 : i32
    scf.if %12 {
      %c0 = arith.constant 0 : index
      %c0_4 = arith.constant 0 : index
      %c0_5 = arith.constant 0 : index
      %13 = vector.load %arg11[%c0, %c0_4, %c0_5] : memref<1x256x128xf32, #tpu.memory_space<vmem>>, vector<1x256x128xf32>
      %14 = vector.shape_cast %13 : vector<1x256x128xf32> to vector<256x128xf32>
      %15 = arith.index_cast %arg0 : i32 to index
      %16 = memref.load %arg2[%15] : memref<2xi32, #tpu.memory_space<smem>>
      %17 = arith.sitofp %16 : i32 to f32
      %cst = arith.constant 1.000000e+00 : f32
      %18 = arith.divf %cst, %17 : f32
      %cst_6 = arith.constant dense<0.000000e+00> : vector<128xf32>
      %19 = vector.multi_reduction <add>, %14, %cst_6 [0] : vector<256x128xf32> to vector<128xf32>
      %20 = vector.shape_cast %19 : vector<128xf32> to vector<1x128xf32>
      %21 = vector.broadcast %18 : f32 to vector<1x128xf32>
      %22 = arith.mulf %20, %21 : vector<1x128xf32>
      %23 = vector.broadcast %22 : vector<1x128xf32> to vector<256x128xf32>
      %24 = arith.subf %14, %23 : vector<256x128xf32>
      %25 = arith.mulf %24, %24 : vector<256x128xf32>
      %cst_7 = arith.constant dense<0.000000e+00> : vector<128xf32>
      %26 = vector.multi_reduction <add>, %25, %cst_7 [0] : vector<256x128xf32> to vector<128xf32>
      %27 = vector.shape_cast %26 : vector<128xf32> to vector<1x128xf32>
      %cst_8 = arith.constant 2.560000e+02 : f32
      %28 = arith.subf %cst_8, %17 : f32
      %29 = arith.mulf %22, %22 : vector<1x128xf32>
      %30 = vector.broadcast %28 : f32 to vector<1x128xf32>
      %31 = arith.mulf %30, %29 : vector<1x128xf32>
      %32 = arith.subf %27, %31 : vector<1x128xf32>
      %33 = vector.broadcast %18 : f32 to vector<1x128xf32>
      %34 = arith.mulf %32, %33 : vector<1x128xf32>
      %cst_9 = arith.constant 0.000000e+00 : f32
      %35 = vector.broadcast %cst_9 : f32 to vector<1x128xf32>
      %36 = arith.maximumf %34, %35 : vector<1x128xf32>
      %cst_10 = arith.constant 9.99999974E-6 : f32
      %37 = vector.broadcast %cst_10 : f32 to vector<1x128xf32>
      %38 = arith.addf %36, %37 : vector<1x128xf32>
      %39 = math.rsqrt %38 : vector<1x128xf32>
      %40 = vector.broadcast %39 : vector<1x128xf32> to vector<256x128xf32>
      %41 = arith.mulf %24, %40 : vector<256x128xf32>
      %c0_11 = arith.constant 0 : index
      %c0_12 = arith.constant 0 : index
      %42 = vector.load %arg9[%c0_11, %c0_12] : memref<1x128xf32, #tpu.memory_space<vmem>>, vector<1x128xf32>
      %43 = vector.broadcast %42 : vector<1x128xf32> to vector<256x128xf32>
      %44 = arith.mulf %41, %43 : vector<256x128xf32>
      %c0_13 = arith.constant 0 : index
      %c0_14 = arith.constant 0 : index
      %45 = vector.load %arg10[%c0_13, %c0_14] : memref<1x128xf32, #tpu.memory_space<vmem>>, vector<1x128xf32>
      %46 = vector.broadcast %45 : vector<1x128xf32> to vector<256x128xf32>
      %47 = arith.addf %44, %46 : vector<256x128xf32>
      %cst_15 = arith.constant 0.000000e+00 : f32
      %48 = vector.broadcast %cst_15 : f32 to vector<256x128xf32>
      %49 = arith.maximumf %47, %48 : vector<256x128xf32>
      %c0_16 = arith.constant 0 : index
      %c0_17 = arith.constant 0 : index
      %c0_18 = arith.constant 0 : index
      %50 = vector.load %arg11[%c0_16, %c0_17, %c0_18] : memref<1x256x128xf32, #tpu.memory_space<vmem>>, vector<1x256x128xf32>
      %51 = vector.shape_cast %50 : vector<1x256x128xf32> to vector<256x128xf32>
      %52 = vector.shape_cast %49 : vector<256x128xf32> to vector<1x256x128xf32>
      tpu.vector_store %arg11[%c0_16, %c0_17, %c0_18], %52 {strides = array<i32>} : memref<1x256x128xf32, #tpu.memory_space<vmem>>, vector<1x256x128xf32>,
      %53 = arith.truncf %49 : vector<256x128xf32> to vector<256x128xbf16>
      %c0_19 = arith.constant 0 : index
      %c0_20 = arith.constant 0 : index
      %54 = vector.load %arg8[%c0_19, %c0_20] : memref<128x128xbf16, #tpu.memory_space<vmem>>, vector<128x128xbf16>
      %cst_21 = arith.constant dense<0.000000e+00> : vector<256x128xf32>
      %55 = tpu.matmul %53, %54, %cst_21 {dimension_numbers = #tpu.dot_dimension_numbers<[1], [0], [0], [1], [0, 0, 1, 1], [], []>} : vector<256x128xbf16>, vector<128x128xbf16>, vector<256x128xf32> -> vector<256x128xf32>
      %c0_22 = arith.constant 0 : index
      %c0_23 = arith.constant 0 : index
      %c0_24 = arith.constant 0 : index
      %56 = vector.load %arg7[%c0_22, %c0_23, %c0_24] : memref<1x8x256xbf16, #tpu.memory_space<vmem>>, vector<1x8x256xbf16>
      %57 = vector.shape_cast %56 : vector<1x8x256xbf16> to vector<8x256xbf16>
      %58 = arith.truncf %55 : vector<256x128xf32> to vector<256x128xbf16>
      %cst_25 = arith.constant dense<0.000000e+00> : vector<8x128xf32>
      %59 = tpu.matmul %57, %58, %cst_25 {dimension_numbers = #tpu.dot_dimension_numbers<[1], [0], [0], [1], [0, 0, 1, 1], [], []>} : vector<8x256xbf16>, vector<256x128xbf16>, vector<8x128xf32> -> vector<8x128xf32>
      %c0_26 = arith.constant 0 : index
      %c0_27 = arith.constant 0 : index
      %c0_28 = arith.constant 0 : index
      %60 = vector.load %arg12[%c0_26, %c0_27, %c0_28] : memref<1x8x128xf32, #tpu.memory_space<vmem>>, vector<1x8x128xf32>
      %61 = vector.shape_cast %60 : vector<1x8x128xf32> to vector<8x128xf32>
      %62 = vector.shape_cast %59 : vector<8x128xf32> to vector<1x8x128xf32>
      tpu.vector_store %arg12[%c0_26, %c0_27, %c0_28], %62 {strides = array<i32>} : memref<1x8x128xf32, #tpu.memory_space<vmem>>, vector<1x8x128xf32>,
    } else {
    }
    return
  }
  func.func @transform_0(%arg0: i32, %arg1: i32, %arg2: memref<2xi32, #tpu.memory_space<smem>>, %arg3: memref<2xf32, #tpu.memory_space<smem>>) -> (i32, i32, i32) {
    %c0_i32 = arith.constant 0 : i32
    %c0_i32_0 = arith.constant 0 : i32
    return %arg0, %c0_i32, %arg1 : i32, i32, i32
  }
  func.func @transform_1(%arg0: i32, %arg1: i32, %arg2: memref<2xi32, #tpu.memory_space<smem>>, %arg3: memref<2xf32, #tpu.memory_space<smem>>) -> (i32, i32, i32) {
    %c0_i32 = arith.constant 0 : i32
    %c0_i32_0 = arith.constant 0 : i32
    return %arg0, %arg1, %c0_i32 : i32, i32, i32
  }
  func.func @transform_2(%arg0: i32, %arg1: i32, %arg2: memref<2xi32, #tpu.memory_space<smem>>, %arg3: memref<2xf32, #tpu.memory_space<smem>>) -> (i32, i32, i32) {
    %c0_i32 = arith.constant 0 : i32
    %c0_i32_0 = arith.constant 0 : i32
    return %arg0, %arg1, %c0_i32 : i32, i32, i32
  }
  func.func @transform_3(%arg0: i32, %arg1: i32, %arg2: memref<2xi32, #tpu.memory_space<smem>>, %arg3: memref<2xf32, #tpu.memory_space<smem>>) -> (i32, i32, i32) {
    %c0_i32 = arith.constant 0 : i32
    %c0_i32_0 = arith.constant 0 : i32
    %c0_i32_1 = arith.constant 0 : i32
    return %arg0, %c0_i32, %c0_i32_0 : i32, i32, i32
  }
  func.func @transform_4(%arg0: i32, %arg1: i32, %arg2: memref<2xi32, #tpu.memory_space<smem>>, %arg3: memref<2xf32, #tpu.memory_space<smem>>) -> (i32, i32) {
    %c0_i32 = arith.constant 0 : i32
    %c0_i32_0 = arith.constant 0 : i32
    %c0_i32_1 = arith.constant 0 : i32
    return %c0_i32, %c0_i32_0 : i32, i32
  }
  func.func @transform_5(%arg0: i32, %arg1: i32, %arg2: memref<2xi32, #tpu.memory_space<smem>>, %arg3: memref<2xf32, #tpu.memory_space<smem>>) -> (i32, i32) {
    %c0_i32 = arith.constant 0 : i32
    %c0_i32_0 = arith.constant 0 : i32
    %c0_i32_1 = arith.constant 0 : i32
    return %c0_i32, %c0_i32_0 : i32, i32
  }
  func.func @transform_6(%arg0: i32, %arg1: i32, %arg2: memref<2xi32, #tpu.memory_space<smem>>, %arg3: memref<2xf32, #tpu.memory_space<smem>>) -> (i32, i32) {
    %c0_i32 = arith.constant 0 : i32
    %c0_i32_0 = arith.constant 0 : i32
    %c0_i32_1 = arith.constant 0 : i32
    return %c0_i32, %c0_i32_0 : i32, i32
  }
  func.func @transform_7(%arg0: i32, %arg1: i32, %arg2: memref<2xi32, #tpu.memory_space<smem>>, %arg3: memref<2xf32, #tpu.memory_space<smem>>) -> (i32, i32, i32) {
    %c0_i32 = arith.constant 0 : i32
    %c0_i32_0 = arith.constant 0 : i32
    %c0_i32_1 = arith.constant 0 : i32
    return %arg0, %c0_i32, %c0_i32_0 : i32, i32, i32
  }
  func.func @transform_8(%arg0: i32, %arg1: i32, %arg2: memref<2xi32, #tpu.memory_space<smem>>, %arg3: memref<2xf32, #tpu.memory_space<smem>>) -> (i32, i32, i32) {
    %c0_i32 = arith.constant 0 : i32
    %c0_i32_0 = arith.constant 0 : i32
    %c0_i32_1 = arith.constant 0 : i32
    return %arg0, %c0_i32, %c0_i32_0 : i32, i32, i32
  }
}

</mosaic_0001>

<bundles_post_ra>
// kernel: tpu_custom_call.1
= control target key start
LH: loop header
LB: loop body
LE: loop exit
PB: predicated region body
PF: predicated region fallthrough
CT: control target
= control target key end

     0   :  { %s2808_s19 = smov [#allocation3]   ;;  %s2809_s20 = smov [#allocation4]   ;;  %s3837_s0 = inlined_call_operand.hbm [shape: s32[2], index: 0, kind: input, shape index: {}]   ;;  %s3838_s2 = inlined_call_operand.hbm [shape: s8[2,256,256], index: 2, kind: input, shape index: {}]   ;;  %s3839_s3 = inlined_call_operand.hbm [shape: bf16[2,256,128], index: 3, kind: input, shape index: {}]   ;;  %s3840_s4 = inlined_call_operand.hbm [shape: bf16[2,256,128], index: 4, kind: input, shape index: {}]   ;;  %s3841_s5 = inlined_call_operand.hbm [shape: bf16[2,8,256], index: 5, kind: input, shape index: {}]   ;;  %s3842_s6 = inlined_call_operand.hbm [shape: bf16[128,128], index: 6, kind: input, shape index: {}]   ;;  %s3843_s7 = inlined_call_operand.vmem [shape: f32[1,128], index: 7, kind: input, shape index: {}]   ;;  %s3844_s8 = inlined_call_operand.vmem [shape: f32[1,128], index: 8, kind: input, shape index: {}]   ;;  %s3845_s9 = inlined_call_operand.hbm [shape: f32[2,256,128], index: 9, kind: output, shape index: {0}]   ;;  %s3846_s10 = inlined_call_operand.hbm [shape: f32[2,8,128], index: 10, kind: output, shape index: {1}]   ;;  %s3847_s1 = inlined_call_operand.hbm [shape: f32[2], index: 1, kind: input, shape index: {}]  }
   0x1   :  { %3861 = sst [smem:[#allocation30_spill]] %s3838_s2  ;;  %s17_s15 = sshll.u32 %s3837_s0, 4  ;;  %s18_s15 = int_to_ptr.hbm [resolvable:$true] %s17_s15 }
   0x2   :  { %3862 = sst [smem:[#allocation31_spill]] %s3839_s3  ;;  %s22_s18 = sshll.u32 %s3847_s1, 4  ;;  %s23_s18 = int_to_ptr.hbm [resolvable:$true] %s22_s18 }
   0x3   :  { %3863 = sst [smem:[#allocation32_spill]] %s3842_s6 }
   0x4   :  { %3864 = sst [smem:[#allocation33_spill]] %s3844_s8 }
   0x5   :  { %3865 = sst [smem:[#allocation34_spill]] %s3845_s9 }
   0x6   :  { %3866 = sst [smem:[#allocation35_spill]] %s3846_s10 }
   0x7   :  { %20 = dma.hbm_to_smem %s18_s15, 16, %s2808_s19, [#allocation2] }
   0x8   :  { %25 = dma.hbm_to_smem %s23_s18, 16, %s2809_s20, [#allocation2] }
   0x9   :  { %2758 = dma.done.wait [#allocation2], 32 }
   0xa   :  { %2759 = vsyncadd [#allocation2], 4294967264 }
   0xb   :  { %28 = sfence }
   0xc   :  { %29 = vsyncpa [#allocation6], 0 }
   0xd   :  { %31 = vsyncpa [#allocation6 + $0x1], 0 }
   0xe   :  { %32 = vsyncpa [#allocation9], 0 }
   0xf   :  { %34 = vsyncpa [#allocation9 + $0x1], 0 }
  0x10   :  { %35 = vsyncpa [#allocation12], 0 }
  0x11   :  { %37 = vsyncpa [#allocation12 + $0x1], 0 }
  0x12   :  { %38 = vsyncpa [#allocation7], 0 }
  0x13   :  { %40 = vsyncpa [#allocation7 + $0x1], 0 }
  0x14   :  { %41 = vsyncpa [#allocation16], 0 }
  0x15   :  { %43 = vsyncpa [#allocation16 + $0x1], 0  ;;  %s2879_s0 = smov 0   ;;  %s2881_s1 = smov 0  }
  0x16   :  { %s2883_s21 = smov 0   ;;  %s2885_s22 = smov 0  }
  0x17   :  { %s2887_s23 = smov 0   ;;  %s2889_s24 = smov 0  }
  0x18 LB: > { %3867 = sst [smem:[#allocation24_spill]] %s2786_s0  ;;  %s2910_s25 = sadd.s32 4294967295, %s2806_s24   ;;  %s2806_s24 = sphi %s2889_s24, %s49_s24   ;;  %s2802_s23 = sphi %s2887_s23, %s3896_s23   ;;  %s2798_s22 = sphi %s2885_s22, %s3895_s22   ;;  %s2794_s21 = sphi %s2883_s21, %s3891_s21   ;;  %s2790_s1 = sphi %s2881_s1, %s3894_s1   ;;  %s2786_s0 = sphi %s2879_s0, %s3893_s0  }
  0x19   : > { %3868 = sst [smem:[#allocation25_spill]] %s2794_s21  ;;  %s2118_s26 = sadd.s32 4294967294, %s2806_s24  }
  0x1a   : > { %p83_p0 = scmp.ne.s32.totalorder %s2790_s1, %s2786_s0  ;;  %p84_p1 = scmp.eq.s32.totalorder %s2910_s25, 0 }
  0x1b   : > { %p252_p2 = scmp.eq.s32.totalorder %s2910_s25, 1  ;;  %p258_p3 = scmp.eq.s32.totalorder %s2118_s26, 1 }
  0x1c   : > { %p2919_p4 = por %p84_p1, %p83_p0  ;;  %p2119_p5 = scmp.ge.s32.totalorder %s2806_s24, 1 }
  0x1d   : > { %p2924_p6 = por %p258_p3, %p83_p0  ;;  %p291_p7 = scmp.lt.s32.totalorder %s2806_s24, 3 }
  0x1e   : > { %s3872_s6 = sld [smem:[#allocation32_spill]]  ;;  %s2810_s13 = smov [#allocation13]  }
  0x1f   : > { %s3870_s28 = scalar_select %p2924_p6, 1, 0 }
  0x20   : > { %p2932_p8 = pnand %p2119_p5, %p291_p7  ;;  %s304_s14 = sshll.u32 %s2810_s13, 4  ;;  %s305_s14 = int_to_ptr.vmem [resolvable:$true] %s304_s14 }
  0x21   : > { %3871 = sst [smem:[#allocation26_spill]] %s3870_s28  ;;  %p2121_p11 = scmp.ge.s32.totalorder %s2806_s24, 2 }
  0x22   : > { %p2412_p9 = pneg %p2932_p8  ;;  %s3848_s15 = smov 64  }
  0x23   : > { %s3850_s16 = smov 4   ;;  %s61_s17 = sadd.s32 1, %s2802_s23 }
  0x24   : > { %s302_s11 = sshll.u32 %s3872_s6, 4  ;;  %p2413_p10 = pnand %p2412_p9, %p84_p1  ;;  %s303_s11 = int_to_ptr.hbm [resolvable:$true] %s302_s11 }
  0x25   : > { %p63_p12 = scmp.ge.s32.totalorder %s61_s17, 2  ;;  %s70_s18 = sadd.s32 1, %s2794_s21 }
  0x26   : > { %2415 = dma.hbm_to_vmem [thread:$0]  (!%p2413_p10), %s303_s11, 1024, %s305_s14, [#allocation12], %s3848_s15, %s3848_s15, %s3850_s16  }
  0x27   : > { %p77_p13 = scmp.ne.s32.totalorder %s2794_s21, %s2790_s1  ;;  %p78_p0 = scmp.eq.s32.totalorder %s2806_s24, 0 }
  0x28   : > { %s3898_s17 = smov (%p63_p12, %s61_s17), 0  ;;  %p2437_p7 = scmp.lt.s32.totalorder %s2806_s24, 2 }
  0x29   : > { %3874 = sst [smem:[#allocation27_spill]] %s3898_s17  ;;  %p79_p3 = por %p78_p0, %p77_p13 }
  0x2a   : > { %p2953_p5 = por %p252_p2, %p77_p13  ;;  %s65_s20 = ssub.s32 %s2802_s23, %s3898_s17 }
  0x2b   : > { %p68_p9 = scmp.eq.s32.totalorder %s65_s20, 0  ;;  %s2961_s26 = sand.u32 1, %s2794_s21  }
  0x2c   : > { %s3875_s19 = scalar_select %p2953_p5, 1, 0 }
  0x2d   : > { %s2122_s29 = sshll.u32 %s2961_s26, 7  ;;  %s2183_s30 = sshll.u32 %s2802_s23, 7 }
  0x2e   : > { %3876 = sst [smem:[#allocation28_spill]] %s3875_s19  ;;  %p2968_p10 = pnand %p2437_p7, %p79_p3 }
  0x2f   : > { %s2966_s11 = scalar_select %p68_p9, %s2794_s21, %s70_s18  }
  0x30   : > { %s3858_s14 = sand.u32 1, %s2806_s24   ;;  %s3879_s3 = sld [smem:[#allocation31_spill]] }
  0x31   : > { %3877 = sst [smem:[#allocation29_spill]] %s2966_s11  ;;  %s352_s20 = scalar_lea.vmem [#allocation8], %s2122_s29 }
  0x32   : > { %s362_s28 = sshll.u32 %s352_s20, 4  ;;  %s349_s18 = scalar_lea.sflag [#allocation9], %s3858_s14  ;;  %s363_s28 = int_to_ptr.vmem [resolvable:$true] %s362_s28 }
  0x33   : > { %s3880_s11 = smov 4   ;;  %s3881_s21 = smov 64  }
  0x34   : > { %s3882_s2 = sld [smem:[#allocation30_spill]]  ;;  %s328_s15 = scalar_lea.vmem [#allocation5], %s2122_s29 }
  0x35   : > { %s325_s20 = scalar_lea.sflag [#allocation6], %s2961_s26  ;;  %s2814_s14 = smov 16  }
  0x36   : > { %s359_s6 = scalar_lea.hbm %s3879_s3, %s2183_s30  ;;  %s2813_s3 = smov 256  }
  0x37   : > { %s360_s17 = sshll.u32 %s359_s6, 4  ;;  %s338_s6 = sshll.u32 %s328_s15, 4  ;;  %s361_s17 = int_to_ptr.hbm [resolvable:$true] %s360_s17  ;;  %s339_s6 = int_to_ptr.vmem [resolvable:$true] %s338_s6 }
  0x38   : > { %2422 = dma.hbm_to_vmem [thread:$0]  (!%p2968_p10), %s361_s17, 2048, %s363_s28, %s349_s18, %s3881_s21, %s3881_s21, %s3880_s11  }
  0x39   : > { %s383_s28 = scalar_lea.hbm %s3840_s4, %s2183_s30  ;;  %s376_s10 = scalar_lea.vmem [#allocation10], %s2122_s29 }
  0x3a   : > { %s335_s9 = scalar_lea.hbm %s3882_s2, %s2183_s30  ;;  %s386_s0 = sshll.u32 %s376_s10, 4  ;;  %s387_s0 = int_to_ptr.vmem [resolvable:$true] %s386_s0 }
  0x3b   : > { %s336_s16 = sshll.u32 %s335_s9, 4  ;;  %s384_s17 = sshll.u32 %s383_s28, 4  ;;  %s337_s16 = int_to_ptr.hbm [resolvable:$true] %s336_s16  ;;  %s385_s17 = int_to_ptr.hbm [resolvable:$true] %s384_s17 }
  0x3c   : > { %2419 = dma.hbm_to_vmem [thread:$0]  (!%p2968_p10), %s337_s16, 2048, %s339_s6, %s325_s20, %s2813_s3, %s2813_s3, %s2814_s14  }
  0x3d   : > { %2425 = dma.hbm_to_vmem [thread:$0]  (!%p2968_p10), %s385_s17, 2048, %s387_s0, %s349_s18, %s3881_s21, %s3881_s21, %s3880_s11  }
  0x3e   : > { %s2131_s9 = sshll.u32 %s2961_s26, 3  ;;  %s2186_s15 = sshll.u32 %s2802_s23, 3 }
  0x3f   : > { %s405_s14 = scalar_lea.hbm %s3841_s5, %s2186_s15  ;;  %s400_s19 = scalar_lea.vmem [#allocation11], %s2131_s9 }
  0x40   : > { %s407_s8 = sshll.u32 %s405_s14, 4  ;;  %s409_s30 = sshll.u32 %s400_s19, 4  ;;  %s408_s8 = int_to_ptr.hbm [resolvable:$true] %s407_s8  ;;  %s410_s30 = int_to_ptr.vmem [resolvable:$true] %s409_s30 }
  0x41   : > { %s3883_s29 = sand.u32 1, %s2806_s24   ;;  %418 = sbr.rel (%p2932_p8) target bundleno = 983 (0x3d7), region = 48 }
  0x42   : > { %s397_s6 = scalar_lea.sflag [#allocation12], %s3883_s29  ;;  %s3009_s21 = sand.u32 (!%p2932_p8), 1, %s2790_s1  }
  0x43   : > { %2428 = dma.hbm_to_vmem [thread:$0]  (!%p2968_p10), %s408_s8, 128, %s410_s30, %s397_s6  }
  0x44   : > { %s2135_s2 = sshll.u32 (!%p2932_p8), %s3009_s21, 7  ;;  %s421_s26 = scalar_lea.sflag (!%p2932_p8), [#allocation6], %s3009_s21 }
  0x45   : > { %s3013_s11 = scalar_lea.vmem (!%p2932_p8), [#allocation5], %s2135_s2 }
  0x46   : > { %2761 = dma.done.wait (%p2919_p4), %s421_s26, 2048  }
  0x47   : > { %2763 = vsyncadd (%p2919_p4), %s421_s26, 4294965248  ;;  %s430_s13 = sand.u32 1, %s2910_s25   ;;  %s3020_s18 = scalar_lea.vmem [#allocation8], %s2135_s2 }
  0x48   : > { %s431_s12 = scalar_lea.sflag [#allocation9], %s430_s13 }
  0x49   : > { %2765 = dma.done.wait (%p2919_p4), %s431_s12, 4096  }
  0x4a   : > { %2767 = vsyncadd (%p2919_p4), %s431_s12, 4294963200  ;;  %s2138_s16 = sshll.u32 %s3009_s21, 3  ;;  %s3027_s20 = scalar_lea.vmem [#allocation10], %s2135_s2 }
  0x4b   : > { %s451_s28 = scalar_lea.sflag [#allocation12], %s430_s13  ;;  %s3031_s10 = scalar_lea.vmem [#allocation11], %s2138_s16 }
  0x4c   : > { %2769 = dma.done.wait (%p2919_p4), %s451_s28, 128  }
  0x4d   : > { %2771 = vsyncadd (%p2919_p4), %s451_s28, 4294967168 }
  0x4e   : > { %2773 = dma.done.wait (%p84_p1), [#allocation12], 1024  }
  0x4f   : > { %2775 = vsyncadd (%p84_p1), [#allocation12], 4294966272  ;;  %s2140_s0 = sshll.u32 %s3009_s21, 8  ;;  %s3043_s17 = sld [smem:[#allocation3 + %s2798_s22]]  ;;  %v2815_v0 = vmov 0.0  }
  0x50   : > { %s3045_s9 = scalar_lea.vmem [#allocation14], %s2140_s0  ;;  %s3081_s25 = scalar_lea.vmem [#allocation15], %s2138_s16 }
  0x51   : > { %520 = vst [vmem:[%s3045_s9] sm:$0xff] %v2815_v0 }
  0x52   : > { %521 = vst [vmem:[%s3045_s9 + $0x8] sm:$0xff] %v2815_v0 }
  0x53   : > { %522 = vst [vmem:[%s3045_s9 + $0x10] sm:$0xff] %v2815_v0 }
  0x54   : > { %523 = vst [vmem:[%s3045_s9 + $0x18] sm:$0xff] %v2815_v0 }
  0x55   : > { %524 = vst [vmem:[%s3045_s9 + $0x20] sm:$0xff] %v2815_v0  ;;  %p2143_p1 = scmp.le.s32.totalorder %s3043_s17, 0 }
  0x56   : > { %525 = vst [vmem:[%s3045_s9 + $0x28] sm:$0xff] %v2815_v0  ;;  %s638_s27 = sld [smem:[#allocation4 + %s2798_s22]] (!%p2143_p1) }
  0x57   : > { %526 = vst [vmem:[%s3045_s9 + $0x30] sm:$0xff] %v2815_v0 }
  0x58   : > { %527 = vst [vmem:[%s3045_s9 + $0x38] sm:$0xff] %v2815_v0 }
  0x59   : > { %528 = vst [vmem:[%s3045_s9 + $0x40] sm:$0xff] %v2815_v0 }
  0x5a   : > { %529 = vst [vmem:[%s3045_s9 + $0x48] sm:$0xff] %v2815_v0 }
  0x5b   : > { %530 = vst [vmem:[%s3045_s9 + $0x50] sm:$0xff] %v2815_v0 }
  0x5c   : > { %531 = vst [vmem:[%s3045_s9 + $0x58] sm:$0xff] %v2815_v0 }
  0x5d   : > { %532 = vst [vmem:[%s3045_s9 + $0x60] sm:$0xff] %v2815_v0 }
  0x5e   : > { %533 = vst [vmem:[%s3045_s9 + $0x68] sm:$0xff] %v2815_v0 }
  0x5f   : > { %534 = vst [vmem:[%s3045_s9 + $0x70] sm:$0xff] %v2815_v0 }
  0x60   : > { %535 = vst [vmem:[%s3045_s9 + $0x78] sm:$0xff] %v2815_v0 }
  0x61   : > { %536 = vst [vmem:[%s3045_s9 + $0x80] sm:$0xff] %v2815_v0 }
  0x62   : > { %537 = vst [vmem:[%s3045_s9 + $0x88] sm:$0xff] %v2815_v0 }
  0x63   : > { %538 = vst [vmem:[%s3045_s9 + $0x90] sm:$0xff] %v2815_v0 }
  0x64   : > { %539 = vst [vmem:[%s3045_s9 + $0x98] sm:$0xff] %v2815_v0 }
  0x65   : > { %540 = vst [vmem:[%s3045_s9 + $0xa0] sm:$0xff] %v2815_v0 }
  0x66   : > { %541 = vst [vmem:[%s3045_s9 + $0xa8] sm:$0xff] %v2815_v0 }
  0x67   : > { %542 = vst [vmem:[%s3045_s9 + $0xb0] sm:$0xff] %v2815_v0 }
  0x68   : > { %543 = vst [vmem:[%s3045_s9 + $0xb8] sm:$0xff] %v2815_v0 }
  0x69   : > { %544 = vst [vmem:[%s3045_s9 + $0xc0] sm:$0xff] %v2815_v0 }
  0x6a   : > { %545 = vst [vmem:[%s3045_s9 + $0xc8] sm:$0xff] %v2815_v0 }
  0x6b   : > { %546 = vst [vmem:[%s3045_s9 + $0xd0] sm:$0xff] %v2815_v0 }
  0x6c   : > { %547 = vst [vmem:[%s3045_s9 + $0xd8] sm:$0xff] %v2815_v0  ;;  %557 = sbr.rel (%p2143_p1) target bundleno = 412 (0x19c), region = 76 }
  0x6d   : > { %548 = vst [vmem:[%s3045_s9 + $0xe0] sm:$0xff] %v2815_v0 }
  0x6e   : > { %549 = vst [vmem:[%s3045_s9 + $0xe8] sm:$0xff] %v2815_v0 }
  0x6f   : > { %550 = vst [vmem:[%s3045_s9 + $0xf0] sm:$0xff] %v2815_v0 }
  0x70   : > { %551 = vst [vmem:[%s3045_s9 + $0xf8] sm:$0xff] %v2815_v0 }
  0x71   : > { %v2330_v1 = vld [vmem:[%s3020_s18 + $0x38] sm:$0xff]   ;;  %v2329_v3 = vld [vmem:[%s3020_s18 + $0x30] sm:$0xff]   ;;  %v2328_v5 = vld [vmem:[%s3020_s18 + $0x28] sm:$0xff]   ;;  %v3091_v16 = vstv %s638_s27 }
  0x72   : > { %v2338_v2 = vld [vmem:[%s3020_s18 + $0x78] sm:$0xff]   ;;  %v2337_v4 = vld [vmem:[%s3020_s18 + $0x70] sm:$0xff]   ;;  %v2226_v6 = vunpack.c.l.bf16 %v2330_v1  ;;  %v2227_v7 = vunpack.c.h.bf16 %v2330_v1  ;;  %v2336_v10 = vld [vmem:[%s3020_s18 + $0x68] sm:$0xff]   ;;  %v2222_v11 = vunpack.c.l.bf16 %v2329_v3  ;;  %v2223_v12 = vunpack.c.h.bf16 %v2329_v3 }
  0x73   : > { %v2258_v8 = vunpack.c.l.bf16 %v2338_v2  ;;  %v2259_v9 = vunpack.c.h.bf16 %v2338_v2  ;;  %v2254_v13 = vunpack.c.l.bf16 %v2337_v4  ;;  %v2255_v14 = vunpack.c.h.bf16 %v2337_v4  ;;  %v2327_v24 = vld [vmem:[%s3020_s18 + $0x20] sm:$0xff]   ;;  %v2326_v38 = vld [vmem:[%s3020_s18 + $0x18] sm:$0xff]   ;;  %v2325_v50 = vld [vmem:[%s3020_s18 + $0x10] sm:$0xff]  }
  0x74   : > { %v2218_v15 = vunpack.c.l.bf16 %v2328_v5  ;;  %v2219_v17 = vunpack.c.h.bf16 %v2328_v5  ;;  %v2250_v18 = vunpack.c.l.bf16 %v2336_v10  ;;  %v2251_v19 = vunpack.c.h.bf16 %v2336_v10  ;;  %v2335_v29 = vld [vmem:[%s3020_s18 + $0x60] sm:$0xff]   ;;  %v2334_v43 = vld [vmem:[%s3020_s18 + $0x58] sm:$0xff]   ;;  %v2333_v51 = vld [vmem:[%s3020_s18 + $0x50] sm:$0xff]  }
  0x75   : > { %v654_v20 = vmul.f32 %v2226_v6, %v3091_v16  ;;  %v655_v21 = vmul.f32 %v2227_v7, %v3091_v16  ;;  %v670_v22 = vmul.f32 %v2258_v8, %v3091_v16  ;;  %v671_v23 = vmul.f32 %v2259_v9, %v3091_v16  ;;  %v2324_v59 = vld [vmem:[%s3020_s18 + $0x8] sm:$0xff]   ;;  %v2197_v8 = vld [vmem:[%s3020_s18] sm:$0xff]  }
  0x76   : > { %v652_v25 = vmul.f32 %v2222_v11, %v3091_v16  ;;  %v653_v26 = vmul.f32 %v2223_v12, %v3091_v16  ;;  %v668_v27 = vmul.f32 %v2254_v13, %v3091_v16  ;;  %v669_v28 = vmul.f32 %v2255_v14, %v3091_v16  ;;  %v2332_v5 = vld [vmem:[%s3020_s18 + $0x48] sm:$0xff]  }
  0x77   : > { %v679_v30 = vpack.c.bf16 %v655_v21, %v654_v20  ;;  %v687_v31 = vpack.c.bf16 %v671_v23, %v670_v22  ;;  %v2214_v32 = vunpack.c.l.bf16 %v2327_v24  ;;  %v2215_v33 = vunpack.c.h.bf16 %v2327_v24  ;;  %v3130_v21 = vld [vmem:[%s3013_s11] sm:$0xff] }
  0x78   : > { %v678_v34 = vpack.c.bf16 %v653_v26, %v652_v25  ;;  %v650_v35 = vmul.f32 %v2218_v15, %v3091_v16  ;;  %v651_v36 = vmul.f32 %v2219_v17, %v3091_v16  ;;  %v2246_v37 = vunpack.c.l.bf16 %v2335_v29  ;;  %v3133_v24 = vld [vmem:[%s3013_s11 + $0x40] sm:$0xff] }
  0x79   : > { %880 = vmatpush.bf16.msra.mxu0 %v679_v30  ;;  %2354 = vmatpush.bf16.msra.mxu2 %v679_v30  ;;  %v686_v39 = vpack.c.bf16 %v669_v28, %v668_v27  ;;  %v666_v40 = vmul.f32 %v2250_v18, %v3091_v16  ;;  %v667_v41 = vmul.f32 %v2251_v19, %v3091_v16  ;;  %v2247_v42 = vunpack.c.h.bf16 %v2335_v29  ;;  %v2331_v19 = vld [vmem:[%s3020_s18 + $0x40] sm:$0xff]   ;;  %v591_v29 = vld [vmem:[%s3013_s11 + $0x8] sm:$0xff] }
  0x7a   : > { %969 = vmatpush.bf16.msra.mxu1 %v687_v31  ;;  %2362 = vmatpush.bf16.msra.mxu3 %v687_v31  ;;  %v2210_v44 = vunpack.c.l.bf16 %v2326_v38  ;;  %v2211_v45 = vunpack.c.h.bf16 %v2326_v38  ;;  %v677_v46 = vpack.c.bf16 %v651_v36, %v650_v35  ;;  %v648_v47 = vmul.f32 %v2214_v32, %v3091_v16  ;;  %v599_v30 = vld [vmem:[%s3013_s11 + $0x48] sm:$0xff] }
  0x7b   : > { %v649_v48 = vmul.f32 %v2215_v33, %v3091_v16  ;;  %v2242_v49 = vunpack.c.l.bf16 %v2334_v43  ;;  %v685_v52 = vpack.c.bf16 %v667_v41, %v666_v40  ;;  %v664_v53 = vmul.f32 %v2246_v37, %v3091_v16 }
  0x7c   : > { %v665_v54 = vmul.f32 %v2247_v42, %v3091_v16  ;;  %v2243_v55 = vunpack.c.h.bf16 %v2334_v43  ;;  %v2206_v56 = vunpack.c.l.bf16 %v2325_v50  ;;  %v2207_v57 = vunpack.c.h.bf16 %v2325_v50 }
  0x7d   : > { %881 = vmatpush.bf16.msra.mxu0 %v678_v34  ;;  %2355 = vmatpush.bf16.msra.mxu2 %v678_v34  ;;  %v2238_v58 = vunpack.c.l.bf16 %v2333_v51  ;;  %v676_v60 = vpack.c.bf16 %v649_v48, %v648_v47  ;;  %v646_v61 = vmul.f32 %v2210_v44, %v3091_v16  ;;  %v647_v62 = vmul.f32 %v2211_v45, %v3091_v16 }
  0x7e   : > { %970 = vmatpush.bf16.msra.mxu1 %v686_v39  ;;  %2363 = vmatpush.bf16.msra.mxu3 %v686_v39  ;;  %v2239_v63 = vunpack.c.h.bf16 %v2333_v51  ;;  %v684_v0 = vpack.c.bf16 %v665_v54, %v664_v53  ;;  %v662_v1 = vmul.f32 %v2242_v49, %v3091_v16  ;;  %v663_v2 = vmul.f32 %v2243_v55, %v3091_v16 }
  0x7f   : > { %v2202_v3 = vunpack.c.l.bf16 %v2324_v59  ;;  %v2203_v4 = vunpack.c.h.bf16 %v2324_v59  ;;  %v644_v6 = vmul.f32 %v2206_v56, %v3091_v16  ;;  %v645_v7 = vmul.f32 %v2207_v57, %v3091_v16 }
  0x80   : > { %v675_v9 = vpack.c.bf16 %v647_v62, %v646_v61  ;;  %v660_v10 = vmul.f32 %v2238_v58, %v3091_v16  ;;  %v661_v11 = vmul.f32 %v2239_v63, %v3091_v16  ;;  %v683_v12 = vpack.c.bf16 %v663_v2, %v662_v1 }
  0x81   : > { %882 = vmatpush.bf16.msra.mxu0 %v677_v46  ;;  %2356 = vmatpush.bf16.msra.mxu2 %v677_v46  ;;  %v2234_v13 = vunpack.c.l.bf16 %v2332_v5  ;;  %v2235_v14 = vunpack.c.h.bf16 %v2332_v5  ;;  %v642_v15 = vmul.f32 %v2202_v3, %v3091_v16  ;;  %v643_v17 = vmul.f32 %v2203_v4, %v3091_v16 }
  0x82   : > { %971 = vmatpush.bf16.msra.mxu1 %v685_v52  ;;  %2364 = vmatpush.bf16.msra.mxu3 %v685_v52  ;;  %v2198_v18 = vunpack.c.l.bf16 %v2197_v8  ;;  %v2199_v20 = vunpack.c.h.bf16 %v2197_v8  ;;  %v674_v22 = vpack.c.bf16 %v645_v7, %v644_v6  ;;  %v682_v23 = vpack.c.bf16 %v661_v11, %v660_v10 }
  0x83   : > { %v658_v25 = vmul.f32 %v2234_v13, %v3091_v16  ;;  %v659_v26 = vmul.f32 %v2235_v14, %v3091_v16  ;;  %v2230_v27 = vunpack.c.l.bf16 %v2331_v19  ;;  %v2231_v28 = vunpack.c.h.bf16 %v2331_v19  ;;  %v592_v14 = vld [vmem:[%s3013_s11 + $0x10] sm:$0xff] }
  0x84   : > { %v673_v31 = vpack.c.bf16 %v643_v17, %v642_v15  ;;  %v640_v32 = vmul.f32 %v2198_v18, %v3091_v16  ;;  %v688_v33 = vunpack.c.0.s8 %v3130_v21  ;;  %v641_v34 = vmul.f32 %v2199_v20, %v3091_v16  ;;  %v600_v15 = vld [vmem:[%s3013_s11 + $0x50] sm:$0xff]  ;;  %v593_v17 = vld [vmem:[%s3013_s11 + $0x18] sm:$0xff] }
  0x85   : > { %883 = vmatpush.bf16.msra.mxu0 %v676_v60  ;;  %2357 = vmatpush.bf16.msra.mxu2 %v676_v60  ;;  %v690_v35 = vunpack.c.1.s8 %v3130_v21  ;;  %v720_v36 = vunpack.c.0.s8 %v3133_v24  ;;  %v722_v37 = vunpack.c.1.s8 %v3133_v24  ;;  %v689_v38 = vunpack.c.0.s8 %v591_v29  ;;  %v601_v18 = vld [vmem:[%s3013_s11 + $0x58] sm:$0xff] }
  0x86   : > { %972 = vmatpush.bf16.msra.mxu1 %v684_v0  ;;  %2365 = vmatpush.bf16.msra.mxu3 %v684_v0  ;;  %v691_v39 = vunpack.c.1.s8 %v591_v29  ;;  %v721_v40 = vunpack.c.0.s8 %v599_v30  ;;  %v723_v41 = vunpack.c.1.s8 %v599_v30  ;;  %v681_v42 = vpack.c.bf16 %v659_v26, %v658_v25 }
  0x87   : > { %v656_v43 = vmul.f32 %v2230_v27, %v3091_v16  ;;  %v657_v44 = vmul.f32 %v2231_v28, %v3091_v16  ;;  %v752_v45 = vcvt.s32.f32 %v688_v33  ;;  %v672_v46 = vpack.c.bf16 %v641_v34, %v640_v32 }
  0x88   : > { %v754_v47 = vcvt.s32.f32 %v690_v35  ;;  %v784_v48 = vcvt.s32.f32 %v720_v36  ;;  %v786_v49 = vcvt.s32.f32 %v722_v37  ;;  %v753_v50 = vcvt.s32.f32 %v689_v38 }
  0x89   : > { %884 = vmatpush.bf16.msra.mxu0 %v675_v9  ;;  %2358 = vmatpush.bf16.msra.mxu2 %v675_v9  ;;  %v755_v51 = vcvt.s32.f32 %v691_v39  ;;  %v785_v52 = vcvt.s32.f32 %v721_v40  ;;  %v787_v53 = vcvt.s32.f32 %v723_v41  ;;  %v680_v54 = vpack.c.bf16 %v657_v44, %v656_v43 }
  0x8a   : > { %973 = vmatpush.bf16.msra.mxu1 %v683_v12  ;;  %2366 = vmatpush.bf16.msra.mxu3 %v683_v12  ;;  %v816_v55 = vpack.c.bf16 %v754_v47, %v752_v45  ;;  %v832_v56 = vpack.c.bf16 %v786_v49, %v784_v48  ;;  %v692_v58 = vunpack.c.2.s8 %v3130_v21  ;;  %v694_v59 = vunpack.c.3.s8 %v3130_v21 }
  0x8b   : > { %v817_v57 = vpack.c.bf16 %v755_v51, %v753_v50  ;;  %v833_v16 = vpack.c.bf16 %v787_v53, %v785_v52  ;;  %v724_v60 = vunpack.c.2.s8 %v3133_v24  ;;  %v726_v61 = vunpack.c.3.s8 %v3133_v24 }
  0x8c   : > { %v693_v62 = vunpack.c.2.s8 %v591_v29  ;;  %v695_v63 = vunpack.c.3.s8 %v591_v29  ;;  %v725_v0 = vunpack.c.2.s8 %v599_v30  ;;  %v727_v1 = vunpack.c.3.s8 %v599_v30 }
  0x8d   : > { %885 = vmatpush.bf16.msra.mxu0 %v674_v22  ;;  %2359 = vmatpush.bf16.msra.mxu2 %v674_v22  ;;  %v756_v2 = vcvt.s32.f32 %v692_v58  ;;  %v758_v3 = vcvt.s32.f32 %v694_v59  ;;  %v788_v4 = vcvt.s32.f32 %v724_v60  ;;  %v790_v5 = vcvt.s32.f32 %v726_v61  ;;  %v594_v58 = vld [vmem:[%s3013_s11 + $0x20] sm:$0xff]  ;;  %v595_v60 = vld [vmem:[%s3013_s11 + $0x28] sm:$0xff] }
  0x8e   : > { %974 = vmatpush.bf16.msra.mxu1 %v682_v23  ;;  %2367 = vmatpush.bf16.msra.mxu3 %v682_v23  ;;  %v757_v6 = vcvt.s32.f32 %v693_v62  ;;  %v759_v7 = vcvt.s32.f32 %v695_v63  ;;  %v789_v8 = vcvt.s32.f32 %v725_v0  ;;  %v791_v9 = vcvt.s32.f32 %v727_v1  ;;  %v602_v59 = vld [vmem:[%s3013_s11 + $0x60] sm:$0xff]  ;;  %v603_v61 = vld [vmem:[%s3013_s11 + $0x68] sm:$0xff] }
  0x8f   : > { %v818_v10 = vpack.c.bf16 %v758_v3, %v756_v2  ;;  %v834_v11 = vpack.c.bf16 %v790_v5, %v788_v4  ;;  %v696_v19 = vunpack.c.0.s8 %v592_v14  ;;  %v698_v20 = vunpack.c.1.s8 %v592_v14 }
  0x90   : > { %v819_v12 = vpack.c.bf16 %v759_v7, %v757_v6  ;;  %v835_v13 = vpack.c.bf16 %v791_v9, %v789_v8  ;;  %v728_v21 = vunpack.c.0.s8 %v600_v15  ;;  %v730_v22 = vunpack.c.1.s8 %v600_v15 }
  0x91   : > { %886 = vmatpush.bf16.msra.mxu0 %v673_v31  ;;  %2360 = vmatpush.bf16.msra.mxu2 %v673_v31  ;;  %v697_v23 = vunpack.c.0.s8 %v593_v17  ;;  %v699_v24 = vunpack.c.1.s8 %v593_v17  ;;  %v729_v25 = vunpack.c.0.s8 %v601_v18  ;;  %v731_v26 = vunpack.c.1.s8 %v601_v18 }
  0x92   : > { %975 = vmatpush.bf16.msra.mxu1 %v681_v42  ;;  %2368 = vmatpush.bf16.msra.mxu3 %v681_v42  ;;  %v760_v27 = vcvt.s32.f32 %v696_v19  ;;  %v762_v28 = vcvt.s32.f32 %v698_v20  ;;  %v792_v29 = vcvt.s32.f32 %v728_v21  ;;  %v794_v30 = vcvt.s32.f32 %v730_v22 }
  0x93   : > { %v761_v31 = vcvt.s32.f32 %v697_v23  ;;  %v763_v32 = vcvt.s32.f32 %v699_v24  ;;  %v793_v33 = vcvt.s32.f32 %v729_v25  ;;  %v795_v34 = vcvt.s32.f32 %v731_v26 }
  0x94   : > { %v820_v35 = vpack.c.bf16 %v762_v28, %v760_v27  ;;  %v836_v36 = vpack.c.bf16 %v794_v30, %v792_v29  ;;  %v700_v39 = vunpack.c.2.s8 %v592_v14  ;;  %v702_v40 = vunpack.c.3.s8 %v592_v14 }
  0x95   : > { %887 = vmatpush.bf16.msra.mxu0 %v672_v46  ;;  %2361 = vmatpush.bf16.msra.mxu2 %v672_v46  ;;  %v821_v37 = vpack.c.bf16 %v763_v32, %v761_v31  ;;  %v837_v38 = vpack.c.bf16 %v795_v34, %v793_v33  ;;  %v732_v41 = vunpack.c.2.s8 %v600_v15  ;;  %v734_v42 = vunpack.c.3.s8 %v600_v15 }
  0x96   : > { %976 = vmatpush.bf16.msra.mxu1 %v680_v54  ;;  %2369 = vmatpush.bf16.msra.mxu3 %v680_v54  ;;  %v701_v43 = vunpack.c.2.s8 %v593_v17  ;;  %v703_v44 = vunpack.c.3.s8 %v593_v17  ;;  %v733_v45 = vunpack.c.2.s8 %v601_v18  ;;  %v735_v46 = vunpack.c.3.s8 %v601_v18 }
  0x97   : > { %v764_v47 = vcvt.s32.f32 %v700_v39  ;;  %v766_v48 = vcvt.s32.f32 %v702_v40  ;;  %v796_v49 = vcvt.s32.f32 %v732_v41  ;;  %v798_v50 = vcvt.s32.f32 %v734_v42  ;;  %v596_v39 = vld [vmem:[%s3013_s11 + $0x30] sm:$0xff]  ;;  %v597_v41 = vld [vmem:[%s3013_s11 + $0x38] sm:$0xff] }
  0x98   : > { %888 = vmatmul.bf16.vlgmr.msra.gmra.mxu0 %v816_v55  ;;  %928 = vmatmul.bf16.vlgmr.msra.gmra.mxu2 %v832_v56  ;;  %v765_v51 = vcvt.s32.f32 %v701_v43  ;;  %v767_v52 = vcvt.s32.f32 %v703_v44  ;;  %v797_v53 = vcvt.s32.f32 %v733_v45  ;;  %v799_v54 = vcvt.s32.f32 %v735_v46  ;;  %v604_v40 = vld [vmem:[%s3013_s11 + $0x70] sm:$0xff]  ;;  %v605_v42 = vld [vmem:[%s3013_s11 + $0x78] sm:$0xff] }
  0x99   : > { %977 = vmatmul.bf16.vlgmr.msra.gmra.mxu1 %v817_v57  ;;  %1017 = vmatmul.bf16.vlgmr.msra.gmra.mxu3 %v833_v16  ;;  %v822_v55 = vpack.c.bf16 %v766_v48, %v764_v47  ;;  %v838_v56 = vpack.c.bf16 %v798_v50, %v796_v49  ;;  %v704_v62 = vunpack.c.0.s8 %v594_v58  ;;  %v706_v63 = vunpack.c.1.s8 %v594_v58 }
  0x9a   : > { %v823_v57 = vpack.c.bf16 %v767_v52, %v765_v51  ;;  %v839_v16 = vpack.c.bf16 %v799_v54, %v797_v53  ;;  %v736_v0 = vunpack.c.0.s8 %v602_v59  ;;  %v738_v1 = vunpack.c.1.s8 %v602_v59 }
  0x9b   : > { %v705_v2 = vunpack.c.0.s8 %v595_v60  ;;  %v707_v3 = vunpack.c.1.s8 %v595_v60  ;;  %v737_v4 = vunpack.c.0.s8 %v603_v61  ;;  %v739_v5 = vunpack.c.1.s8 %v603_v61 }
  0x9c   : > { %v768_v6 = vcvt.s32.f32 %v704_v62  ;;  %v770_v7 = vcvt.s32.f32 %v706_v63  ;;  %v800_v8 = vcvt.s32.f32 %v736_v0  ;;  %v802_v9 = vcvt.s32.f32 %v738_v1 }
  0x9d   : > { %v708_v19 = vunpack.c.2.s8 %v594_v58  ;;  %v710_v20 = vunpack.c.3.s8 %v594_v58  ;;  %v740_v21 = vunpack.c.2.s8 %v602_v59  ;;  %v742_v22 = vunpack.c.3.s8 %v602_v59 }
  0x9e   : > { %v824_v14 = vpack.c.bf16 %v770_v7, %v768_v6  ;;  %v840_v15 = vpack.c.bf16 %v802_v9, %v800_v8  ;;  %v709_v23 = vunpack.c.2.s8 %v595_v60  ;;  %v711_v24 = vunpack.c.3.s8 %v595_v60 }
  0x9f   : > { %v741_v25 = vunpack.c.2.s8 %v603_v61  ;;  %v743_v26 = vunpack.c.3.s8 %v603_v61  ;;  %v772_v27 = vcvt.s32.f32 %v708_v19  ;;  %v774_v28 = vcvt.s32.f32 %v710_v20  ;;  %v2261_v19 = vld [vmem:[%s3027_s20] sm:$0xff]  }
  0xa0   : > { %v804_v29 = vcvt.s32.f32 %v740_v21  ;;  %v806_v30 = vcvt.s32.f32 %v742_v22  ;;  %v773_v31 = vcvt.s32.f32 %v709_v23  ;;  %v775_v32 = vcvt.s32.f32 %v711_v24  ;;  %v848_v21 = vld [vmem:[%s3045_s9] sm:$0xff] }
  0xa1   : > { %v805_v33 = vcvt.s32.f32 %v741_v25  ;;  %v807_v34 = vcvt.s32.f32 %v743_v26  ;;  %v712_v43 = vunpack.c.0.s8 %v596_v39  ;;  %v714_v44 = vunpack.c.1.s8 %v596_v39  ;;  %v2346_v26 = vld [vmem:[%s3027_s20 + $0x40] sm:$0xff]  }
  0xa2   : > { %v744_v45 = vunpack.c.0.s8 %v604_v40  ;;  %v746_v46 = vunpack.c.1.s8 %v604_v40  ;;  %v713_v47 = vunpack.c.0.s8 %v597_v41  ;;  %v715_v48 = vunpack.c.1.s8 %v597_v41 }
  0xa3   : > { %v745_v49 = vunpack.c.0.s8 %v605_v42  ;;  %v747_v50 = vunpack.c.1.s8 %v605_v42  ;;  %v776_v51 = vcvt.s32.f32 %v712_v43  ;;  %v778_v52 = vcvt.s32.f32 %v714_v44  ;;  %v865_v43 = vld [vmem:[%s3045_s9 + $0x88] sm:$0xff] }
  0xa4   : > { %v808_v53 = vcvt.s32.f32 %v744_v45  ;;  %v810_v54 = vcvt.s32.f32 %v746_v46  ;;  %v716_v62 = vunpack.c.2.s8 %v596_v39  ;;  %v718_v63 = vunpack.c.3.s8 %v596_v39  ;;  %v2339_v45 = vld [vmem:[%s3027_s20 + $0x8] sm:$0xff]  }
  0xa5   : > { %v828_v58 = vpack.c.bf16 %v778_v52, %v776_v51  ;;  %v748_v0 = vunpack.c.2.s8 %v604_v40  ;;  %v750_v1 = vunpack.c.3.s8 %v604_v40  ;;  %v2262_v24 = vunpack.c.l.bf16 %v2261_v19 }
  0xa6   : > { %v844_v59 = vpack.c.bf16 %v810_v54, %v808_v53  ;;  %v780_v6 = vcvt.s32.f32 %v716_v62  ;;  %v782_v7 = vcvt.s32.f32 %v718_v63  ;;  %v2266_v53 = vunpack.c.l.bf16 %v2339_v45  ;;  %v851_v63 = vld [vmem:[%s3045_s9 + $0x18] sm:$0xff] }
  0xa7   : > { %v812_v8 = vcvt.s32.f32 %v748_v0  ;;  %v814_v9 = vcvt.s32.f32 %v750_v1 }
  0xa8   : > { %893 = vmatmul.bf16.gmra.mxu0 %v818_v10  ;;  %933 = vmatmul.bf16.gmra.mxu2 %v834_v11  ;;  %v769_v10 = vcvt.s32.f32 %v705_v2  ;;  %v771_v11 = vcvt.s32.f32 %v707_v3  ;;  %v717_v2 = vunpack.c.2.s8 %v597_v41  ;;  %v719_v3 = vunpack.c.3.s8 %v597_v41 }
  0xa9   : > { %982 = vmatmul.bf16.gmra.mxu1 %v819_v12  ;;  %1022 = vmatmul.bf16.gmra.mxu3 %v835_v13  ;;  %v801_v12 = vcvt.s32.f32 %v737_v4  ;;  %v803_v13 = vcvt.s32.f32 %v739_v5  ;;  %v749_v4 = vunpack.c.2.s8 %v605_v42  ;;  %v751_v5 = vunpack.c.3.s8 %v605_v42 }
  0xaa   : > { %v825_v17 = vpack.c.bf16 %v771_v11, %v769_v10  ;;  %v781_v10 = vcvt.s32.f32 %v717_v2  ;;  %v783_v11 = vcvt.s32.f32 %v719_v3  ;;  %v2267_v3 = vunpack.c.h.bf16 %v2339_v45  ;;  %v854_v45 = vld [vmem:[%s3045_s9 + $0x30] sm:$0xff] }
  0xab   : > { %v841_v18 = vpack.c.bf16 %v803_v13, %v801_v12  ;;  %v813_v12 = vcvt.s32.f32 %v749_v4  ;;  %v815_v13 = vcvt.s32.f32 %v751_v5 }
  0xb8   : > { %898 = vmatmul.bf16.gmra.mxu0 %v820_v35  ;;  %938 = vmatmul.bf16.gmra.mxu2 %v836_v36  ;;  %v826_v35 = vpack.c.bf16 %v774_v28, %v772_v27  ;;  %v842_v36 = vpack.c.bf16 %v806_v30, %v804_v29  ;;  %v864_v29 = vld [vmem:[%s3045_s9 + $0x80] sm:$0xff] }
  0xb9   : > { %987 = vmatmul.bf16.gmra.mxu1 %v821_v37  ;;  %1027 = vmatmul.bf16.gmra.mxu3 %v837_v38  ;;  %v827_v37 = vpack.c.bf16 %v775_v32, %v773_v31  ;;  %v843_v38 = vpack.c.bf16 %v807_v34, %v805_v33  ;;  %v2294_v32 = vunpack.c.l.bf16 %v2346_v26  ;;  %v849_v34 = vld [vmem:[%s3045_s9 + $0x8] sm:$0xff] }
  0xc8   : > { %903 = vmatmul.bf16.gmra.mxu0 %v822_v55  ;;  %943 = vmatmul.bf16.gmra.mxu2 %v838_v56  ;;  %v777_v55 = vcvt.s32.f32 %v713_v47  ;;  %v779_v56 = vcvt.s32.f32 %v715_v48  ;;  %v2295_v47 = vunpack.c.h.bf16 %v2346_v26 }
  0xc9   : > { %992 = vmatmul.bf16.gmra.mxu1 %v823_v57  ;;  %1032 = vmatmul.bf16.gmra.mxu3 %v839_v16  ;;  %v809_v57 = vcvt.s32.f32 %v745_v49  ;;  %v811_v16 = vcvt.s32.f32 %v747_v50  ;;  %v850_v49 = vld [vmem:[%s3045_s9 + $0x10] sm:$0xff] }
  0xca   : > { %v829_v60 = vpack.c.bf16 %v779_v56, %v777_v55  ;;  %v2347_v56 = vld [vmem:[%s3027_s20 + $0x48] sm:$0xff]  }
  0xcb   : > { %v845_v61 = vpack.c.bf16 %v811_v16, %v809_v57 }
  0xd8   : > { %908 = vmatmul.bf16.gmra.mxu0 %v824_v14  ;;  %948 = vmatmul.bf16.gmra.mxu2 %v840_v15  ;;  %v830_v14 = vpack.c.bf16 %v782_v7, %v780_v6  ;;  %v846_v15 = vpack.c.bf16 %v814_v9, %v812_v8  ;;  %v867_v8 = vld [vmem:[%s3045_s9 + $0x98] sm:$0xff] }
  0xd9   : > { %997 = vmatmul.bf16.gmra.mxu1 %v825_v17  ;;  %1037 = vmatmul.bf16.gmra.mxu3 %v841_v18  ;;  %v831_v17 = vpack.c.bf16 %v783_v11, %v781_v10  ;;  %v847_v18 = vpack.c.bf16 %v815_v13, %v813_v12  ;;  %v2340_v10 = vld [vmem:[%s3027_s20 + $0x10] sm:$0xff]   ;;  %v2299_v12 = vunpack.c.h.bf16 %v2347_v56 }
  0xe8   : > { %913 = vmatmul.bf16.gmra.mxu0 %v826_v35  ;;  %953 = vmatmul.bf16.gmra.mxu2 %v842_v36 }
  0xe9   : > { %1002 = vmatmul.bf16.gmra.mxu1 %v827_v37  ;;  %1042 = vmatmul.bf16.gmra.mxu3 %v843_v38  ;;  %v2263_v38 = vunpack.c.h.bf16 %v2261_v19  ;;  %v2270_v19 = vunpack.c.l.bf16 %v2340_v10 }
  0xf8   : > { %918 = vmatmul.bf16.gmra.mxu0 %v828_v58  ;;  %958 = vmatmul.bf16.gmra.mxu2 %v844_v59  ;;  %v866_v58 = vld [vmem:[%s3045_s9 + $0x90] sm:$0xff] }
  0xf9   : > { %1007 = vmatmul.bf16.gmra.mxu1 %v829_v60  ;;  %1047 = vmatmul.bf16.gmra.mxu3 %v845_v61  ;;  %v2298_v61 = vunpack.c.l.bf16 %v2347_v56 }
 0x108   : > { %923 = vmatmul.bf16.gmra.mxu0 %v830_v14  ;;  %963 = vmatmul.bf16.gmra.mxu2 %v846_v15  ;;  %v852_v14 = vld [vmem:[%s3045_s9 + $0x20] sm:$0xff] }
 0x109   : > { %1012 = vmatmul.bf16.gmra.mxu1 %v831_v17  ;;  %1052 = vmatmul.bf16.gmra.mxu3 %v847_v18 }
 0x115   : > { %v889_v20 = vpop.f32.mrf.mxu0 }
 0x116   : > { %v978_v22 = vpop.f32.mrf.mxu1 }
 0x117   : > { %v979_v23 = vadd.f32 %v978_v22, %v889_v20  ;;  %v2348_v22 = vld [vmem:[%s3027_s20 + $0x50] sm:$0xff]  }
 0x119   : > { %v1058_v25 = vadd.f32 %v979_v23, %v848_v21 }
 0x11b   : > { %v1219_v27 = vadd.f32 %v2262_v24, %v1058_v25  ;;  %v929_v28 = vpop.f32.mrf.mxu2  ;;  %v868_v25 = vld [vmem:[%s3045_s9 + $0xa0] sm:$0xff] }
 0x11c   : > { %v1018_v30 = vpop.f32.mrf.mxu3 }
 0x11d   : > { %1251 = vst [vmem:[%s3045_s9] sm:$0xff] %v1219_v27  ;;  %v1019_v31 = vadd.f32 %v1018_v30, %v929_v28  ;;  %v891_v33 = vpop.f32.mrf.mxu0  ;;  %v2302_v28 = vunpack.c.l.bf16 %v2348_v22  ;;  %v853_v30 = vld [vmem:[%s3045_s9 + $0x28] sm:$0xff] }
 0x11e   : > { %v980_v35 = vpop.f32.mrf.mxu1 }
 0x11f   : > { %v1074_v36 = vadd.f32 %v1019_v31, %v864_v29  ;;  %v981_v37 = vadd.f32 %v980_v35, %v891_v33 }
 0x121   : > { %v1235_v39 = vadd.f32 %v2294_v32, %v1074_v36  ;;  %v1059_v40 = vadd.f32 %v981_v37, %v849_v34  ;;  %v2271_v34 = vunpack.c.h.bf16 %v2340_v10  ;;  %v856_v10 = vld [vmem:[%s3045_s9 + $0x40] sm:$0xff] }
 0x123   : > { %1267 = vst [vmem:[%s3045_s9 + $0x80] sm:$0xff] %v1235_v39  ;;  %v1220_v41 = vadd.f32 %v2263_v38, %v1059_v40  ;;  %v931_v42 = vpop.f32.mrf.mxu2  ;;  %v869_v39 = vld [vmem:[%s3045_s9 + $0xa8] sm:$0xff] }
 0x124   : > { %v1020_v44 = vpop.f32.mrf.mxu3 }
 0x125   : > { %1252 = vst [vmem:[%s3045_s9 + $0x8] sm:$0xff] %v1220_v41  ;;  %v1021_v46 = vadd.f32 %v1020_v44, %v931_v42  ;;  %v894_v48 = vpop.f32.mrf.mxu0  ;;  %v2341_v41 = vld [vmem:[%s3027_s20 + $0x18] sm:$0xff]  }
 0x126   : > { %v983_v50 = vpop.f32.mrf.mxu1 }
 0x127   : > { %v1075_v51 = vadd.f32 %v1021_v46, %v865_v43  ;;  %v984_v52 = vadd.f32 %v983_v50, %v894_v48  ;;  %v2303_v43 = vunpack.c.h.bf16 %v2348_v22 }
 0x129   : > { %v1236_v54 = vadd.f32 %v2295_v47, %v1075_v51  ;;  %v1060_v55 = vadd.f32 %v984_v52, %v850_v49  ;;  %v2274_v49 = vunpack.c.l.bf16 %v2341_v41  ;;  %v2349_v52 = vld [vmem:[%s3027_s20 + $0x58] sm:$0xff]  }
 0x12b   : > { %1268 = vst [vmem:[%s3045_s9 + $0x88] sm:$0xff] %v1236_v54  ;;  %v1221_v57 = vadd.f32 %v2266_v53, %v1060_v55  ;;  %v934_v16 = vpop.f32.mrf.mxu2  ;;  %v870_v55 = vld [vmem:[%s3045_s9 + $0xb0] sm:$0xff] }
 0x12c   : > { %v1023_v59 = vpop.f32.mrf.mxu3 }
 0x12d   : > { %1253 = vst [vmem:[%s3045_s9 + $0x10] sm:$0xff] %v1221_v57  ;;  %v1024_v60 = vadd.f32 %v1023_v59, %v934_v16  ;;  %v896_v62 = vpop.f32.mrf.mxu0  ;;  %v2306_v16 = vunpack.c.l.bf16 %v2349_v52  ;;  %v855_v59 = vld [vmem:[%s3045_s9 + $0x38] sm:$0xff] }
 0x12e   : > { %v985_v0 = vpop.f32.mrf.mxu1 }
 0x12f   : > { %v1076_v1 = vadd.f32 %v1024_v60, %v866_v58  ;;  %v986_v2 = vadd.f32 %v985_v0, %v896_v62 }
 0x131   : > { %v1237_v4 = vadd.f32 %v2298_v61, %v1076_v1  ;;  %v1061_v5 = vadd.f32 %v986_v2, %v851_v63  ;;  %v2275_v63 = vunpack.c.h.bf16 %v2341_v41  ;;  %v858_v41 = vld [vmem:[%s3045_s9 + $0x50] sm:$0xff] }
 0x133   : > { %1269 = vst [vmem:[%s3045_s9 + $0x90] sm:$0xff] %v1237_v4  ;;  %v1222_v6 = vadd.f32 %v2267_v3, %v1061_v5  ;;  %v936_v7 = vpop.f32.mrf.mxu2  ;;  %v871_v4 = vld [vmem:[%s3045_s9 + $0xb8] sm:$0xff] }
 0x134   : > { %v1025_v9 = vpop.f32.mrf.mxu3 }
 0x135   : > { %1254 = vst [vmem:[%s3045_s9 + $0x18] sm:$0xff] %v1222_v6  ;;  %v1026_v11 = vadd.f32 %v1025_v9, %v936_v7  ;;  %v899_v13 = vpop.f32.mrf.mxu0  ;;  %v2342_v6 = vld [vmem:[%s3027_s20 + $0x20] sm:$0xff]  }
 0x136   : > { %v988_v15 = vpop.f32.mrf.mxu1 }
 0x137   : > { %v1077_v17 = vadd.f32 %v1026_v11, %v867_v8  ;;  %v989_v18 = vadd.f32 %v988_v15, %v899_v13  ;;  %v2307_v8 = vunpack.c.h.bf16 %v2349_v52 }
 0x139   : > { %v1238_v20 = vadd.f32 %v2299_v12, %v1077_v17  ;;  %v1062_v21 = vadd.f32 %v989_v18, %v852_v14  ;;  %v2278_v14 = vunpack.c.l.bf16 %v2342_v6  ;;  %v2350_v18 = vld [vmem:[%s3027_s20 + $0x60] sm:$0xff]  }
 0x13b   : > { %1270 = vst [vmem:[%s3045_s9 + $0x98] sm:$0xff] %v1238_v20  ;;  %v1223_v23 = vadd.f32 %v2270_v19, %v1062_v21  ;;  %v939_v24 = vpop.f32.mrf.mxu2  ;;  %v872_v21 = vld [vmem:[%s3045_s9 + $0xc0] sm:$0xff] }
 0x13c   : > { %v1028_v26 = vpop.f32.mrf.mxu3 }
 0x13d   : > { %1255 = vst [vmem:[%s3045_s9 + $0x20] sm:$0xff] %v1223_v23  ;;  %v1029_v27 = vadd.f32 %v1028_v26, %v939_v24  ;;  %v901_v29 = vpop.f32.mrf.mxu0  ;;  %v2310_v24 = vunpack.c.l.bf16 %v2350_v18  ;;  %v857_v26 = vld [vmem:[%s3045_s9 + $0x48] sm:$0xff] }
 0x13e   : > { %v990_v31 = vpop.f32.mrf.mxu1 }
 0x13f   : > { %v1078_v32 = vadd.f32 %v1029_v27, %v868_v25  ;;  %v991_v33 = vadd.f32 %v990_v31, %v901_v29 }
 0x141   : > { %v1239_v35 = vadd.f32 %v2302_v28, %v1078_v32  ;;  %v1063_v36 = vadd.f32 %v991_v33, %v853_v30  ;;  %v2279_v30 = vunpack.c.h.bf16 %v2342_v6  ;;  %v860_v6 = vld [vmem:[%s3045_s9 + $0x60] sm:$0xff] }
 0x143   : > { %1271 = vst [vmem:[%s3045_s9 + $0xa0] sm:$0xff] %v1239_v35  ;;  %v1224_v37 = vadd.f32 %v2271_v34, %v1063_v36  ;;  %v941_v38 = vpop.f32.mrf.mxu2  ;;  %v873_v35 = vld [vmem:[%s3045_s9 + $0xc8] sm:$0xff] }
 0x144   : > { %v1030_v40 = vpop.f32.mrf.mxu3 }
 0x145   : > { %1256 = vst [vmem:[%s3045_s9 + $0x28] sm:$0xff] %v1224_v37  ;;  %v1031_v42 = vadd.f32 %v1030_v40, %v941_v38  ;;  %v904_v44 = vpop.f32.mrf.mxu0  ;;  %v2343_v37 = vld [vmem:[%s3027_s20 + $0x28] sm:$0xff]  }
 0x146   : > { %v993_v46 = vpop.f32.mrf.mxu1 }
 0x147   : > { %v1079_v47 = vadd.f32 %v1031_v42, %v869_v39  ;;  %v994_v48 = vadd.f32 %v993_v46, %v904_v44  ;;  %v2311_v39 = vunpack.c.h.bf16 %v2350_v18 }
 0x149   : > { %v1240_v50 = vadd.f32 %v2303_v43, %v1079_v47  ;;  %v1064_v51 = vadd.f32 %v994_v48, %v854_v45  ;;  %v2282_v45 = vunpack.c.l.bf16 %v2343_v37  ;;  %v2351_v48 = vld [vmem:[%s3027_s20 + $0x68] sm:$0xff]  }
 0x14b   : > { %1272 = vst [vmem:[%s3045_s9 + $0xa8] sm:$0xff] %v1240_v50  ;;  %v1225_v53 = vadd.f32 %v2274_v49, %v1064_v51  ;;  %v944_v54 = vpop.f32.mrf.mxu2  ;;  %v874_v51 = vld [vmem:[%s3045_s9 + $0xd0] sm:$0xff] }
 0x14c   : > { %v1033_v56 = vpop.f32.mrf.mxu3 }
 0x14d   : > { %1257 = vst [vmem:[%s3045_s9 + $0x30] sm:$0xff] %v1225_v53  ;;  %v1034_v57 = vadd.f32 %v1033_v56, %v944_v54  ;;  %v906_v58 = vpop.f32.mrf.mxu0  ;;  %v2314_v54 = vunpack.c.l.bf16 %v2351_v48  ;;  %v859_v56 = vld [vmem:[%s3045_s9 + $0x58] sm:$0xff] }
 0x14e   : > { %v995_v60 = vpop.f32.mrf.mxu1 }
 0x14f   : > { %v1080_v61 = vadd.f32 %v1034_v57, %v870_v55  ;;  %v996_v62 = vadd.f32 %v995_v60, %v906_v58 }
 0x151   : > { %v1241_v0 = vadd.f32 %v2306_v16, %v1080_v61  ;;  %v1065_v1 = vadd.f32 %v996_v62, %v855_v59  ;;  %v2283_v59 = vunpack.c.h.bf16 %v2343_v37  ;;  %v862_v37 = vld [vmem:[%s3045_s9 + $0x70] sm:$0xff] }
 0x153   : > { %1273 = vst [vmem:[%s3045_s9 + $0xb0] sm:$0xff] %v1241_v0  ;;  %v1226_v2 = vadd.f32 %v2275_v63, %v1065_v1  ;;  %v946_v3 = vpop.f32.mrf.mxu2  ;;  %v875_v0 = vld [vmem:[%s3045_s9 + $0xd8] sm:$0xff] }
 0x154   : > { %v1035_v5 = vpop.f32.mrf.mxu3 }
 0x155   : > { %1258 = vst [vmem:[%s3045_s9 + $0x38] sm:$0xff] %v1226_v2  ;;  %v1036_v7 = vadd.f32 %v1035_v5, %v946_v3  ;;  %v909_v9 = vpop.f32.mrf.mxu0  ;;  %v2344_v2 = vld [vmem:[%s3027_s20 + $0x30] sm:$0xff]  }
 0x156   : > { %v998_v11 = vpop.f32.mrf.mxu1 }
 0x157   : > { %v1081_v12 = vadd.f32 %v1036_v7, %v871_v4  ;;  %v999_v13 = vadd.f32 %v998_v11, %v909_v9  ;;  %v2315_v4 = vunpack.c.h.bf16 %v2351_v48 }
 0x159   : > { %v1242_v15 = vadd.f32 %v2307_v8, %v1081_v12  ;;  %v1066_v17 = vadd.f32 %v999_v13, %v856_v10  ;;  %v2286_v10 = vunpack.c.l.bf16 %v2344_v2  ;;  %v2352_v13 = vld [vmem:[%s3027_s20 + $0x70] sm:$0xff]  }
 0x15b   : > { %1274 = vst [vmem:[%s3045_s9 + $0xb8] sm:$0xff] %v1242_v15  ;;  %v1227_v19 = vadd.f32 %v2278_v14, %v1066_v17  ;;  %v949_v20 = vpop.f32.mrf.mxu2  ;;  %v876_v17 = vld [vmem:[%s3045_s9 + $0xe0] sm:$0xff] }
 0x15c   : > { %v1038_v22 = vpop.f32.mrf.mxu3 }
 0x15d   : > { %1259 = vst [vmem:[%s3045_s9 + $0x40] sm:$0xff] %v1227_v19  ;;  %v1039_v23 = vadd.f32 %v1038_v22, %v949_v20  ;;  %v911_v25 = vpop.f32.mrf.mxu0  ;;  %v2318_v20 = vunpack.c.l.bf16 %v2352_v13  ;;  %v861_v22 = vld [vmem:[%s3045_s9 + $0x68] sm:$0xff] }
 0x15e   : > { %v1000_v27 = vpop.f32.mrf.mxu1 }
 0x15f   : > { %v1082_v28 = vadd.f32 %v1039_v23, %v872_v21  ;;  %v1001_v29 = vadd.f32 %v1000_v27, %v911_v25 }
 0x161   : > { %v1243_v31 = vadd.f32 %v2310_v24, %v1082_v28  ;;  %v1067_v32 = vadd.f32 %v1001_v29, %v857_v26  ;;  %v2287_v26 = vunpack.c.h.bf16 %v2344_v2 }
 0x163   : > { %1275 = vst [vmem:[%s3045_s9 + $0xc0] sm:$0xff] %v1243_v31  ;;  %v1228_v33 = vadd.f32 %v2279_v30, %v1067_v32  ;;  %v951_v34 = vpop.f32.mrf.mxu2  ;;  %v877_v31 = vld [vmem:[%s3045_s9 + $0xe8] sm:$0xff] }
 0x164   : > { %v1040_v36 = vpop.f32.mrf.mxu3 }
 0x165   : > { %1260 = vst [vmem:[%s3045_s9 + $0x48] sm:$0xff] %v1228_v33  ;;  %v1041_v38 = vadd.f32 %v1040_v36, %v951_v34  ;;  %v914_v40 = vpop.f32.mrf.mxu0  ;;  %v2345_v33 = vld [vmem:[%s3027_s20 + $0x38] sm:$0xff]  }
 0x166   : > { %v1003_v42 = vpop.f32.mrf.mxu1 }
 0x167   : > { %v1083_v43 = vadd.f32 %v1041_v38, %v873_v35  ;;  %v1004_v44 = vadd.f32 %v1003_v42, %v914_v40  ;;  %v2319_v35 = vunpack.c.h.bf16 %v2352_v13 }
 0x169   : > { %v1244_v46 = vadd.f32 %v2311_v39, %v1083_v43  ;;  %v1068_v47 = vadd.f32 %v1004_v44, %v858_v41  ;;  %v2290_v41 = vunpack.c.l.bf16 %v2345_v33  ;;  %v2353_v44 = vld [vmem:[%s3027_s20 + $0x78] sm:$0xff]  }
 0x16b   : > { %1276 = vst [vmem:[%s3045_s9 + $0xc8] sm:$0xff] %v1244_v46  ;;  %v1229_v49 = vadd.f32 %v2282_v45, %v1068_v47  ;;  %v954_v50 = vpop.f32.mrf.mxu2  ;;  %v878_v47 = vld [vmem:[%s3045_s9 + $0xf0] sm:$0xff] }
 0x16c   : > { %v1043_v52 = vpop.f32.mrf.mxu3 }
 0x16d   : > { %1261 = vst [vmem:[%s3045_s9 + $0x50] sm:$0xff] %v1229_v49  ;;  %v1044_v53 = vadd.f32 %v1043_v52, %v954_v50  ;;  %v916_v55 = vpop.f32.mrf.mxu0  ;;  %v2322_v50 = vunpack.c.l.bf16 %v2353_v44  ;;  %v863_v52 = vld [vmem:[%s3045_s9 + $0x78] sm:$0xff] }
 0x16e   : > { %v1005_v57 = vpop.f32.mrf.mxu1 }
 0x16f   : > { %v1084_v16 = vadd.f32 %v1044_v53, %v874_v51  ;;  %v1006_v58 = vadd.f32 %v1005_v57, %v916_v55 }
 0x171   : > { %v1245_v60 = vadd.f32 %v2314_v54, %v1084_v16  ;;  %v1069_v61 = vadd.f32 %v1006_v58, %v859_v56  ;;  %v2291_v56 = vunpack.c.h.bf16 %v2345_v33 }
 0x173   : > { %1277 = vst [vmem:[%s3045_s9 + $0xd0] sm:$0xff] %v1245_v60  ;;  %v1230_v62 = vadd.f32 %v2283_v59, %v1069_v61  ;;  %v956_v63 = vpop.f32.mrf.mxu2  ;;  %v879_v60 = vld [vmem:[%s3045_s9 + $0xf8] sm:$0xff] }
 0x174   : > { %v1045_v1 = vpop.f32.mrf.mxu3 }
 0x175   : > { %1262 = vst [vmem:[%s3045_s9 + $0x58] sm:$0xff] %v1230_v62  ;;  %v1046_v3 = vadd.f32 %v1045_v1, %v956_v63  ;;  %v919_v5 = vpop.f32.mrf.mxu0  ;;  %v2323_v63 = vunpack.c.h.bf16 %v2353_v44 }
 0x176   : > { %v1008_v7 = vpop.f32.mrf.mxu1 }
 0x177   : > { %v1085_v8 = vadd.f32 %v1046_v3, %v875_v0  ;;  %v1009_v9 = vadd.f32 %v1008_v7, %v919_v5 }
 0x179   : > { %v1246_v11 = vadd.f32 %v2315_v4, %v1085_v8  ;;  %v1070_v12 = vadd.f32 %v1009_v9, %v860_v6 }
 0x17b   : > { %1278 = vst [vmem:[%s3045_s9 + $0xd8] sm:$0xff] %v1246_v11  ;;  %v1231_v14 = vadd.f32 %v2286_v10, %v1070_v12  ;;  %v959_v15 = vpop.f32.mrf.mxu2 }
 0x17c   : > { %v1048_v18 = vpop.f32.mrf.mxu3 }
 0x17d   : > { %1263 = vst [vmem:[%s3045_s9 + $0x60] sm:$0xff] %v1231_v14  ;;  %v1049_v19 = vadd.f32 %v1048_v18, %v959_v15  ;;  %v921_v21 = vpop.f32.mrf.mxu0 }
 0x17e   : > { %v1010_v23 = vpop.f32.mrf.mxu1 }
 0x17f   : > { %v1086_v24 = vadd.f32 %v1049_v19, %v876_v17  ;;  %v1011_v25 = vadd.f32 %v1010_v23, %v921_v21 }
 0x181   : > { %v1247_v27 = vadd.f32 %v2318_v20, %v1086_v24  ;;  %v1071_v28 = vadd.f32 %v1011_v25, %v861_v22 }
 0x183   : > { %1279 = vst [vmem:[%s3045_s9 + $0xe0] sm:$0xff] %v1247_v27  ;;  %v1232_v29 = vadd.f32 %v2287_v26, %v1071_v28  ;;  %v961_v30 = vpop.f32.mrf.mxu2 }
 0x184   : > { %v1050_v32 = vpop.f32.mrf.mxu3 }
 0x185   : > { %1264 = vst [vmem:[%s3045_s9 + $0x68] sm:$0xff] %v1232_v29  ;;  %v1051_v34 = vadd.f32 %v1050_v32, %v961_v30  ;;  %v924_v36 = vpop.f32.mrf.mxu0 }
 0x186   : > { %v1013_v38 = vpop.f32.mrf.mxu1 }
 0x187   : > { %v1087_v39 = vadd.f32 %v1051_v34, %v877_v31  ;;  %v1014_v40 = vadd.f32 %v1013_v38, %v924_v36 }
 0x189   : > { %v1248_v42 = vadd.f32 %v2319_v35, %v1087_v39  ;;  %v1072_v43 = vadd.f32 %v1014_v40, %v862_v37 }
 0x18b   : > { %1280 = vst [vmem:[%s3045_s9 + $0xe8] sm:$0xff] %v1248_v42  ;;  %v1233_v45 = vadd.f32 %v2290_v41, %v1072_v43  ;;  %v964_v46 = vpop.f32.mrf.mxu2 }
 0x18c   : > { %v1053_v48 = vpop.f32.mrf.mxu3 }
 0x18d   : > { %1265 = vst [vmem:[%s3045_s9 + $0x70] sm:$0xff] %v1233_v45  ;;  %v1054_v49 = vadd.f32 %v1053_v48, %v964_v46  ;;  %v926_v51 = vpop.f32.mrf.mxu0 }
 0x18e   : > { %v1015_v53 = vpop.f32.mrf.mxu1 }
 0x18f   : > { %v1088_v54 = vadd.f32 %v1054_v49, %v878_v47  ;;  %v1016_v55 = vadd.f32 %v1015_v53, %v926_v51 }
 0x191   : > { %v1249_v57 = vadd.f32 %v2322_v50, %v1088_v54  ;;  %v1073_v16 = vadd.f32 %v1016_v55, %v863_v52 }
 0x193   : > { %1281 = vst [vmem:[%s3045_s9 + $0xf0] sm:$0xff] %v1249_v57  ;;  %v1234_v58 = vadd.f32 %v2291_v56, %v1073_v16  ;;  %v966_v59 = vpop.f32.mrf.mxu2 }
 0x194   : > { %v1055_v61 = vpop.f32.mrf.mxu3 }
 0x195   : > { %1266 = vst [vmem:[%s3045_s9 + $0x78] sm:$0xff] %v1234_v58  ;;  %v1056_v62 = vadd.f32 %v1055_v61, %v966_v59 }
 0x197   : > { %v1089_v0 = vadd.f32 %v1056_v62, %v879_v60 }
 0x199   : > { %v1250_v1 = vadd.f32 %v2323_v63, %v1089_v0 }
 0x19b   : > { %1282 = vst [vmem:[%s3045_s9 + $0xf8] sm:$0xff] %v1250_v1 }
 0x19c PF: > { %s3244_s15 = sld [smem:[#allocation3 + %s2798_s22]]  ;;  %v3247_v2 = vld [vmem:[%s3045_s9] sm:$0xff]  ;;  %v3250_v3 = vld [vmem:[%s3045_s9 + $0x8] sm:$0xff]  ;;  %v3253_v4 = vld [vmem:[%s3045_s9 + $0x10] sm:$0xff]  ;;  %s2195_s11 = sshll.u32 %s2798_s22, 8 }
 0x19d   : > { %v1336_v5 = vadd.f32 %v3250_v3, %v3247_v2  ;;  %v3258_v6 = vld [vmem:[%s3045_s9 + $0x18] sm:$0xff]  ;;  %v3262_v8 = vld [vmem:[%s3045_s9 + $0x20] sm:$0xff]  ;;  %v3267_v10 = vld [vmem:[%s3045_s9 + $0x28] sm:$0xff]  ;;  %s3884_s2 = sld [smem:[#allocation33_spill]]  ;;  %s1900_s20 = sshll.u32 %s3045_s9, 4  ;;  %s1901_s20 = int_to_ptr.vmem [resolvable:$true] %s1900_s20 }
 0x19e   : > { %v3273_v13 = vld [vmem:[%s3045_s9 + $0x30] sm:$0xff]  ;;  %v3277_v15 = vld [vmem:[%s3045_s9 + $0x38] sm:$0xff]  ;;  %v3281_v18 = vld [vmem:[%s3045_s9 + $0x40] sm:$0xff]  ;;  %s3886_s18 = sld [smem:[#allocation34_spill]] }
 0x19f   : > { %v1337_v7 = vadd.f32 %v1336_v5, %v3253_v4  ;;  %v3285_v21 = vld [vmem:[%s3045_s9 + $0x48] sm:$0xff]  ;;  %v3289_v25 = vld [vmem:[%s3045_s9 + $0x50] sm:$0xff]  ;;  %v3293_v29 = vld [vmem:[%s3045_s9 + $0x58] sm:$0xff] }
 0x1a0   : > { %v3297_v33 = vld [vmem:[%s3045_s9 + $0x60] sm:$0xff]  ;;  %v3301_v36 = vld [vmem:[%s3045_s9 + $0x68] sm:$0xff]  ;;  %v3305_v40 = vld [vmem:[%s3045_s9 + $0x70] sm:$0xff] }
 0x1a1   : > { %v1338_v9 = vadd.f32 %v1337_v7, %v3258_v6  ;;  %v3309_v42 = vld [vmem:[%s3045_s9 + $0x78] sm:$0xff]  ;;  %v3313_v44 = vld [vmem:[%s3045_s9 + $0x80] sm:$0xff]  ;;  %v3317_v46 = vld [vmem:[%s3045_s9 + $0x88] sm:$0xff] }
 0x1a2   : > { %s1319_s3 = scvt.s32.f32 %s3244_s15  ;;  %v3321_v48 = vld [vmem:[%s3045_s9 + $0x90] sm:$0xff]  ;;  %v3325_v50 = vld [vmem:[%s3045_s9 + $0x98] sm:$0xff]  ;;  %v3329_v52 = vld [vmem:[%s3045_s9 + $0xa0] sm:$0xff] }
 0x1a3   : > { %v1339_v11 = vadd.f32 %v1338_v9, %v3262_v8  ;;  %v3333_v54 = vld [vmem:[%s3045_s9 + $0xa8] sm:$0xff]  ;;  %v3337_v56 = vld [vmem:[%s3045_s9 + $0xb0] sm:$0xff]  ;;  %v3341_v16 = vld [vmem:[%s3045_s9 + $0xb8] sm:$0xff] }
 0x1a4   : > { %v1320_v12 = vstv %s1319_s3  ;;  %v3345_v59 = vld [vmem:[%s3045_s9 + $0xc0] sm:$0xff]  ;;  %v3349_v61 = vld [vmem:[%s3045_s9 + $0xc8] sm:$0xff]  ;;  %v3353_v63 = vld [vmem:[%s3045_s9 + $0xd0] sm:$0xff]  ;;  %s1476_s8 = ssub.f32 256.0, %s1319_s3  ;;  %s1899_s16 = scalar_lea.hbm %s3886_s18, %s2195_s11 }
 0x1a5   : > { %2500 = vrcp.f32 %v1320_v12  ;;  %v1340_v14 = vadd.f32 %v1339_v11, %v3267_v10  ;;  %vm1326_vm0 = vweird.f32 %v1320_v12  ;;  %v1332_v24 = vand.u32 2147483648, %v1320_v12  ;;  %v3357_v1 = vld [vmem:[%s3045_s9 + $0xd8] sm:$0xff]  ;;  %v3361_v7 = vld [vmem:[%s3045_s9 + $0xe0] sm:$0xff]  ;;  %v3365_v11 = vld [vmem:[%s3045_s9 + $0xe8] sm:$0xff]  ;;  %s1902_s28 = sshll.u32 %s1899_s16, 4  ;;  %s2698_s3 = scalar_lea.hbm %s3886_s18, 512  ;;  %s1903_s28 = int_to_ptr.hbm [resolvable:$true] %s1902_s28 }
 0x1a6   : > { %v1330_v27 = vand.u32 2147483647, %v1320_v12  ;;  %s2692_s0 = sshra.s32 %s1903_s28, 4  ;;  %s2693_s0 = int_to_ptr.hbm [resolvable:$true] %s2692_s0 }
 0x1a7   : > { %v1341_v17 = vadd.f32 %v1340_v14, %v3273_v13  ;;  %v1333_v32 = vor.u32 1.1754944e-38, %v1332_v24  ;;  %v3369_v14 = vld [vmem:[%s3045_s9 + $0xf0] sm:$0xff]  ;;  %s2694_s17 = scalar_lea.hbm %s2693_s0, 256  ;;  %p2699_p12 = scmp.lt.s32.totalorder %s2693_s0, %s3886_s18 }
 0x1a8   : > { %vm1331_vm3 = vcmp.eq.f32.partialorder %v1330_v27, 8.507059e+37  ;;  %p2695_p2 = scmp.ne.s32.totalorder %s2693_s0, %s2694_s17  ;;  %p2700_p13 = scmp.lt.s32.totalorder %s2698_s3, %s2694_s17 }
 0x1a9   : > { %v1342_v19 = vadd.f32 %v1341_v17, %v3277_v15 }
 0x1aa   : > { %p2696_p4 = pnand %p2695_p2, %p2953_p5  ;;  %p2701_p0 = por %p2700_p13, %p2699_p12 }
 0x1ab   : > { %v2501_v20 = vpop.eup %2500  ;;  %v1343_v23 = vadd.f32 %v1342_v19, %v3281_v18  ;;  %v3373_v19 = vld [vmem:[%s3045_s9 + $0xf8] sm:$0xff] }
 0x1ac   : > { %v1322_v22 = vmul.f32 %v2501_v20, %v1320_v12  ;;  %vm1327_vm1 = vweird.f32 %v2501_v20  ;;  %p2697_p8 = pneg %p2696_p4 }
 0x1ad   : > { %v1344_v28 = vadd.f32 %v1343_v23, %v3285_v21  ;;  %vm1328_vm2 = vmor %vm1326_vm0, %vm1327_vm1 }
 0x1ae   : > { %v1323_v26 = vsub.f32 1.0, %v1322_v22  ;;  %p2702_p3 = pnand %p2701_p0, %p2697_p8 }
 0x1af   : > { %v1345_v31 = vadd.f32 %v1344_v28, %v3289_v25 }
 0x1b0   : > { %v1324_v30 = vmul.f32 %v2501_v20, %v1323_v26 }
 0x1b1   : > { %v1346_v35 = vadd.f32 %v1345_v31, %v3293_v29 }
 0x1b2   : > { %v1325_v34 = vadd.f32 %v2501_v20, %v1324_v30 }
 0x1b3   : > { %v1347_v38 = vadd.f32 %v1346_v35, %v3297_v33 }
 0x1b4   : > { %v1329_v37 = vsel %vm1328_vm2, %v2501_v20, %v1325_v34 }
 0x1b5   : > { %v1334_v39 = vsel %vm1331_vm3, %v1333_v32, %v1329_v37  ;;  %v1348_v41 = vadd.f32 %v1347_v38, %v3301_v36 }
 0x1b6   : > { %2394 = vpush %v1334_v39 }
 0x1b7   : > { %v1349_v43 = vadd.f32 %v1348_v41, %v3305_v40  ;;  %v1478_v41 = vstv %s1476_s8 }
 0x1b9   : > { %v1350_v45 = vadd.f32 %v1349_v43, %v3309_v42 }
 0x1bb   : > { %v1351_v47 = vadd.f32 %v1350_v45, %v3313_v44 }
 0x1bd   : > { %v1352_v49 = vadd.f32 %v1351_v47, %v3317_v46 }
 0x1bf   : > { %v1353_v51 = vadd.f32 %v1352_v49, %v3321_v48 }
 0x1c1   : > { %v1354_v53 = vadd.f32 %v1353_v51, %v3325_v50 }
 0x1c3   : > { %v1355_v55 = vadd.f32 %v1354_v53, %v3329_v52 }
 0x1c5   : > { %v1356_v57 = vadd.f32 %v1355_v55, %v3333_v54 }
 0x1c7   : > { %v1357_v58 = vadd.f32 %v1356_v57, %v3337_v56 }
 0x1c9   : > { %v1358_v60 = vadd.f32 %v1357_v58, %v3341_v16 }
 0x1cb   : > { %v1359_v62 = vadd.f32 %v1358_v60, %v3345_v59 }
 0x1cd   : > { %v1360_v0 = vadd.f32 %v1359_v62, %v3349_v61 }
 0x1cf   : > { %v1361_v5 = vadd.f32 %v1360_v0, %v3353_v63 }
 0x1d1   : > { %v1362_v9 = vadd.f32 %v1361_v5, %v3357_v1 }
 0x1d3   : > { %v1363_v12 = vadd.f32 %v1362_v9, %v3361_v7 }
 0x1d5   : > { %v1364_v17 = vadd.f32 %v1363_v12, %v3365_v11 }
 0x1d7   : > { %v1365_v20 = vadd.f32 %v1364_v17, %v3369_v14 }
 0x1d9   : > { %v1366_v22 = vadd.f32 %v1365_v20, %v3373_v19 }
 0x1db   : > { %v1367_v23 = vrot.slane %v1366_v22, 4 }
 0x1dd   : > { %v1368_v24 = vadd.f32 %v1367_v23, %v1366_v22 }
 0x1df   : > { %v1369_v26 = vrot.slane %v1368_v24, 2 }
 0x1e1   : > { %v1370_v27 = vadd.f32 %v1369_v26, %v1368_v24 }
 0x1e3   : > { %v1371_v28 = vrot.slane %v1370_v27, 1 }
 0x1e5   : > { %v1372_v30 = vadd.f32 %v1371_v28, %v1370_v27 }
 0x1e7   : > { %s3377_s14 = spop %2394 }
 0x1e8   : > { %v1373_v31 = vstv %s3377_s14 }
 0x1e9   : > { %v3382_v32 = vmul.f32 %v1373_v31, %v1372_v30 }
 0x1eb   : > { %v3386_v34 = vsub.f32 %v3247_v2, %v3382_v32  ;;  %v3390_v35 = vsub.f32 %v3250_v3, %v3382_v32  ;;  %v3396_v37 = vsub.f32 %v3253_v4, %v3382_v32  ;;  %v3404_v2 = vsub.f32 %v3258_v6, %v3382_v32 }
 0x1ec   : > { %v3408_v3 = vsub.f32 %v3262_v8, %v3382_v32  ;;  %v1477_v45 = vmul.f32 %v3382_v32, %v3382_v32  ;;  %v3416_v47 = vsub.f32 %v3267_v10, %v3382_v32  ;;  %v3424_v8 = vsub.f32 %v3273_v13, %v3382_v32 }
 0x1ed   : > { %v1407_v38 = vmul.f32 %v3386_v34, %v3386_v34  ;;  %v1408_v39 = vmul.f32 %v3390_v35, %v3390_v35  ;;  %v1409_v43 = vmul.f32 %v3396_v37, %v3396_v37  ;;  %v1410_v6 = vmul.f32 %v3404_v2, %v3404_v2 }
 0x1ee   : > { %v3420_v51 = vmul.f32 %v1478_v41, %v1477_v45  ;;  %v1411_v53 = vmul.f32 %v3408_v3, %v3408_v3  ;;  %v3430_v57 = vsub.f32 %v3277_v15, %v3382_v32  ;;  %v1412_v10 = vmul.f32 %v3416_v47, %v3416_v47 }
 0x1ef   : > { %v1439_v4 = vadd.f32 %v1408_v39, %v1407_v38  ;;  %v3436_v60 = vsub.f32 %v3281_v18, %v3382_v32  ;;  %v1413_v13 = vmul.f32 %v3424_v8, %v3424_v8  ;;  %v3442_v0 = vsub.f32 %v3285_v21, %v3382_v32 }
 0x1f0   : > { %v1414_v15 = vmul.f32 %v3430_v57, %v3430_v57  ;;  %v3448_v9 = vsub.f32 %v3289_v25, %v3382_v32  ;;  %v3454_v17 = vsub.f32 %v3293_v29, %v3382_v32  ;;  %v3460_v22 = vsub.f32 %v3297_v33, %v3382_v32 }
 0x1f1   : > { %v1440_v49 = vadd.f32 %v1439_v4, %v1409_v43  ;;  %v1415_v18 = vmul.f32 %v3436_v60, %v3436_v60  ;;  %v1416_v21 = vmul.f32 %v3442_v0, %v3442_v0  ;;  %v3466_v24 = vsub.f32 %v3301_v36, %v3382_v32 }
 0x1f2   : > { %v1417_v25 = vmul.f32 %v3448_v9, %v3448_v9  ;;  %v1418_v29 = vmul.f32 %v3454_v17, %v3454_v17  ;;  %v3472_v27 = vsub.f32 %v3305_v40, %v3382_v32  ;;  %v1419_v33 = vmul.f32 %v3460_v22, %v3460_v22 }
 0x1f3   : > { %v1441_v55 = vadd.f32 %v1440_v49, %v1410_v6  ;;  %v3478_v30 = vsub.f32 %v3309_v42, %v3382_v32  ;;  %v1420_v36 = vmul.f32 %v3466_v24, %v3466_v24  ;;  %v3484_v39 = vsub.f32 %v3313_v44, %v3382_v32 }
 0x1f4   : > { %v1421_v40 = vmul.f32 %v3472_v27, %v3472_v27  ;;  %v3490_v43 = vsub.f32 %v3317_v46, %v3382_v32  ;;  %v3496_v45 = vsub.f32 %v3321_v48, %v3382_v32  ;;  %v3502_v49 = vsub.f32 %v3325_v50, %v3382_v32 }
 0x1f5   : > { %v1442_v58 = vadd.f32 %v1441_v55, %v1411_v53  ;;  %v1422_v42 = vmul.f32 %v3478_v30, %v3478_v30  ;;  %v1423_v44 = vmul.f32 %v3484_v39, %v3484_v39  ;;  %v3508_v55 = vsub.f32 %v3329_v52, %v3382_v32 }
 0x1f6   : > { %v1424_v46 = vmul.f32 %v3490_v43, %v3490_v43  ;;  %v1425_v48 = vmul.f32 %v3496_v45, %v3496_v45  ;;  %v1426_v50 = vmul.f32 %v3502_v49, %v3502_v49 }
 0x1f7   : > { %v1443_v62 = vadd.f32 %v1442_v58, %v1412_v10  ;;  %v3514_v58 = vsub.f32 %v3333_v54, %v3382_v32  ;;  %v1427_v52 = vmul.f32 %v3508_v55, %v3508_v55 }
 0x1f9   : > { %v1444_v5 = vadd.f32 %v1443_v62, %v1413_v13  ;;  %v3520_v62 = vsub.f32 %v3337_v56, %v3382_v32  ;;  %v1428_v54 = vmul.f32 %v3514_v58, %v3514_v58 }
 0x1fb   : > { %v1445_v12 = vadd.f32 %v1444_v5, %v1414_v15  ;;  %v3526_v5 = vsub.f32 %v3341_v16, %v3382_v32  ;;  %v1429_v56 = vmul.f32 %v3520_v62, %v3520_v62 }
 0x1fd   : > { %v1446_v20 = vadd.f32 %v1445_v12, %v1415_v18  ;;  %v3532_v12 = vsub.f32 %v3345_v59, %v3382_v32  ;;  %v1430_v16 = vmul.f32 %v3526_v5, %v3526_v5 }
 0x1ff   : > { %v1447_v23 = vadd.f32 %v1446_v20, %v1416_v21  ;;  %v3538_v20 = vsub.f32 %v3349_v61, %v3382_v32  ;;  %v1431_v59 = vmul.f32 %v3532_v12, %v3532_v12 }
 0x201   : > { %v1448_v26 = vadd.f32 %v1447_v23, %v1417_v25  ;;  %v3544_v23 = vsub.f32 %v3353_v63, %v3382_v32  ;;  %v1432_v61 = vmul.f32 %v3538_v20, %v3538_v20 }
 0x203   : > { %v1449_v28 = vadd.f32 %v1448_v26, %v1418_v29  ;;  %v3550_v26 = vsub.f32 %v3357_v1, %v3382_v32  ;;  %v1433_v63 = vmul.f32 %v3544_v23, %v3544_v23 }
 0x205   : > { %v1450_v38 = vadd.f32 %v1449_v28, %v1419_v33  ;;  %v3556_v28 = vsub.f32 %v3361_v7, %v3382_v32  ;;  %v1434_v1 = vmul.f32 %v3550_v26, %v3550_v26 }
 0x207   : > { %v1451_v41 = vadd.f32 %v1450_v38, %v1420_v36  ;;  %v2194_v38 = vld [vmem:[#allocation13 + $0x38] sm:$0xff]  ;;  %v1435_v7 = vmul.f32 %v3556_v28, %v3556_v28 }
 0x208   : > { %1742 = vmatpush.bf16.msra.mxu0 %v2194_v38  ;;  %2370 = vmatpush.bf16.msra.mxu1 %v2194_v38 }
 0x209   : > { %v1452_v4 = vadd.f32 %v1451_v41, %v1421_v40  ;;  %v3562_v40 = vsub.f32 %v3365_v11, %v3382_v32  ;;  %2371 = vmatpush.bf16.msra.mxu2 %v2194_v38  ;;  %2372 = vmatpush.bf16.msra.mxu3 %v2194_v38  ;;  %v3574_v11 = vsub.f32 %v3373_v19, %v3382_v32 }
 0x20b   : > { %v1453_v6 = vadd.f32 %v1452_v4, %v1422_v42  ;;  %v3568_v42 = vsub.f32 %v3369_v14, %v3382_v32  ;;  %v2191_v32 = vld [vmem:[#allocation13 + $0x20] sm:$0xff] }
 0x20d   : > { %v1454_v53 = vadd.f32 %v1453_v6, %v1423_v44  ;;  %v2193_v44 = vld [vmem:[#allocation13 + $0x30] sm:$0xff]  ;;  %v1436_v6 = vmul.f32 %v3562_v40, %v3562_v40  ;;  %v1437_v14 = vmul.f32 %v3568_v42, %v3568_v42 }
 0x20e   : > { %1743 = vmatpush.bf16.msra.mxu0 %v2193_v44  ;;  %2373 = vmatpush.bf16.msra.mxu1 %v2193_v44 }
 0x20f   : > { %v1455_v10 = vadd.f32 %v1454_v53, %v1424_v46  ;;  %2374 = vmatpush.bf16.msra.mxu2 %v2193_v44  ;;  %2375 = vmatpush.bf16.msra.mxu3 %v2193_v44 }
 0x211   : > { %v1456_v13 = vadd.f32 %v1455_v10, %v1425_v48  ;;  %v2192_v48 = vld [vmem:[#allocation13 + $0x28] sm:$0xff]  ;;  %v1438_v10 = vmul.f32 %v3574_v11, %v3574_v11 }
 0x212   : > { %1744 = vmatpush.bf16.msra.mxu0 %v2192_v48  ;;  %2376 = vmatpush.bf16.msra.mxu1 %v2192_v48 }
 0x213   : > { %v1457_v15 = vadd.f32 %v1456_v13, %v1426_v50  ;;  %2377 = vmatpush.bf16.msra.mxu2 %v2192_v48  ;;  %2378 = vmatpush.bf16.msra.mxu3 %v2192_v48 }
 0x215   : > { %v1458_v18 = vadd.f32 %v1457_v15, %v1427_v52  ;;  %v2190_v15 = vld [vmem:[#allocation13 + $0x18] sm:$0xff] }
 0x216   : > { %1745 = vmatpush.bf16.msra.mxu0 %v2191_v32  ;;  %2379 = vmatpush.bf16.msra.mxu1 %v2191_v32 }
 0x217   : > { %v1459_v21 = vadd.f32 %v1458_v18, %v1428_v54  ;;  %2380 = vmatpush.bf16.msra.mxu2 %v2191_v32  ;;  %2381 = vmatpush.bf16.msra.mxu3 %v2191_v32  ;;  %v2189_v18 = vld [vmem:[#allocation13 + $0x10] sm:$0xff] }
 0x219   : > { %v1460_v25 = vadd.f32 %v1459_v21, %v1429_v56 }
 0x21a   : > { %1746 = vmatpush.bf16.msra.mxu0 %v2190_v15  ;;  %2382 = vmatpush.bf16.msra.mxu1 %v2190_v15 }
 0x21b   : > { %v1461_v29 = vadd.f32 %v1460_v25, %v1430_v16  ;;  %2383 = vmatpush.bf16.msra.mxu2 %v2190_v15  ;;  %2384 = vmatpush.bf16.msra.mxu3 %v2190_v15  ;;  %v2188_v16 = vld [vmem:[#allocation13 + $0x8] sm:$0xff] }
 0x21d   : > { %v1462_v33 = vadd.f32 %v1461_v29, %v1431_v59  ;;  %v2187_v29 = vld [vmem:[#allocation13] sm:$0xff] }
 0x21e   : > { %1747 = vmatpush.bf16.msra.mxu0 %v2189_v18  ;;  %2385 = vmatpush.bf16.msra.mxu1 %v2189_v18 }
 0x21f   : > { %v1463_v36 = vadd.f32 %v1462_v33, %v1432_v61  ;;  %2386 = vmatpush.bf16.msra.mxu2 %v2189_v18  ;;  %2387 = vmatpush.bf16.msra.mxu3 %v2189_v18 }
 0x221   : > { %v1464_v41 = vadd.f32 %v1463_v36, %v1433_v63 }
 0x222   : > { %1748 = vmatpush.bf16.msra.mxu0 %v2188_v16  ;;  %2388 = vmatpush.bf16.msra.mxu1 %v2188_v16 }
 0x223   : > { %v1465_v4 = vadd.f32 %v1464_v41, %v1434_v1  ;;  %2389 = vmatpush.bf16.msra.mxu2 %v2188_v16  ;;  %2390 = vmatpush.bf16.msra.mxu3 %v2188_v16 }
 0x225   : > { %v1466_v46 = vadd.f32 %v1465_v4, %v1435_v7 }
 0x226   : > { %1749 = vmatpush.bf16.msra.mxu0 %v2187_v29  ;;  %2391 = vmatpush.bf16.msra.mxu1 %v2187_v29 }
 0x227   : > { %v1467_v53 = vadd.f32 %v1466_v46, %v1436_v6  ;;  %2392 = vmatpush.bf16.msra.mxu2 %v2187_v29  ;;  %2393 = vmatpush.bf16.msra.mxu3 %v2187_v29  ;;  %v3599_v46 = vld [vmem:[%s3884_s2] ss:$0 sm:$0xff] }
 0x229   : > { %v1468_v50 = vadd.f32 %v1467_v53, %v1437_v14 }
 0x22b   : > { %v1469_v19 = vadd.f32 %v1468_v50, %v1438_v10 }
 0x22d   : > { %v1470_v13 = vrot.slane %v1469_v19, 4 }
 0x22f   : > { %v1471_v52 = vadd.f32 %v1470_v13, %v1469_v19 }
 0x231   : > { %v1472_v54 = vrot.slane %v1471_v52, 2 }
 0x233   : > { %v1473_v56 = vadd.f32 %v1472_v54, %v1471_v52 }
 0x235   : > { %v1474_v21 = vrot.slane %v1473_v56, 1 }
 0x237   : > { %v1475_v25 = vadd.f32 %v1474_v21, %v1473_v56 }
 0x239   : > { %v1480_v59 = vsub.f32 %v1475_v25, %v3420_v51 }
 0x23b   : > { %v1481_v61 = vmul.f32 %v1480_v59, %v1373_v31  ;;  %v3588_v31 = vld [vmem:[%s3843_s7] ss:$0 sm:$0xff] }
 0x23d   : > { %v1482_v33 = vmax.f32 %v1481_v61, 0.0 }
 0x23f   : > { %v1483_v63 = vadd.f32 1e-05, %v1482_v33 }
 0x241   : > { %2502 = vrsqrt.f32 %v1483_v63  ;;  %vm1490_vm5 = vweird.f32 %v1483_v63 }
 0x247   : > { %v2503_v36 = vpop.eup %2502 }
 0x248   : > { %v1485_v38 = vmul.f32 %v2503_v36, %v1483_v63  ;;  %vm1491_vm4 = vweird.f32 %v2503_v36 }
 0x249   : > { %vm1492_vm6 = vmor %vm1490_vm5, %vm1491_vm4 }
 0x24a   : > { %v1486_v1 = vmul.f32 %v2503_v36, %v1485_v38 }
 0x24c   : > { %v1487_v41 = vmul.f32 0.5, %v1486_v1 }
 0x24e   : > { %v1488_v7 = vsub.f32 1.5, %v1487_v41 }
 0x250   : > { %v1489_v51 = vmul.f32 %v2503_v36, %v1488_v7 }
 0x252   : > { %v3590_v4 = vsel %vm1492_vm6, %v2503_v36, %v1489_v51 }
 0x253   : > { %v1494_v44 = vmul.f32 %v3590_v4, %v3386_v34  ;;  %v1495_v6 = vmul.f32 %v3590_v4, %v3390_v35  ;;  %v1504_v14 = vmul.f32 %v3590_v4, %v3448_v9  ;;  %v1505_v53 = vmul.f32 %v3590_v4, %v3454_v17 }
 0x254   : > { %v1508_v48 = vmul.f32 %v3590_v4, %v3472_v27  ;;  %v1509_v34 = vmul.f32 %v3590_v4, %v3478_v30  ;;  %v1516_v35 = vmul.f32 %v3590_v4, %v3520_v62  ;;  %v1517_v10 = vmul.f32 %v3590_v4, %v3526_v5 }
 0x255   : > { %v1530_v50 = vmul.f32 %v3588_v31, %v1494_v44  ;;  %v1531_v19 = vmul.f32 %v3588_v31, %v1495_v6  ;;  %v1540_v9 = vmul.f32 %v3588_v31, %v1504_v14  ;;  %v1541_v17 = vmul.f32 %v3588_v31, %v1505_v53 }
 0x256   : > { %v1544_v32 = vmul.f32 %v3588_v31, %v1508_v48  ;;  %v1545_v27 = vmul.f32 %v3588_v31, %v1509_v34  ;;  %v1552_v30 = vmul.f32 %v3588_v31, %v1516_v35  ;;  %v1553_v13 = vmul.f32 %v3588_v31, %v1517_v10 }
 0x257   : > { %v1566_v62 = vadd.f32 %v3599_v46, %v1530_v50  ;;  %v1567_v5 = vadd.f32 %v3599_v46, %v1531_v19  ;;  %v1576_v52 = vadd.f32 %v3599_v46, %v1540_v9  ;;  %v1577_v15 = vadd.f32 %v3599_v46, %v1541_v17 }
 0x258   : > { %v1580_v54 = vadd.f32 %v3599_v46, %v1544_v32  ;;  %v1581_v18 = vadd.f32 %v3599_v46, %v1545_v27  ;;  %v1588_v56 = vadd.f32 %v3599_v46, %v1552_v30  ;;  %v1589_v21 = vadd.f32 %v3599_v46, %v1553_v13 }
 0x259   : > { %v1598_v16 = vmax.f32 %v1566_v62, 0.0  ;;  %v1599_v25 = vmax.f32 %v1567_v5, 0.0  ;;  %v1608_v59 = vmax.f32 %v1576_v52, 0.0  ;;  %v1609_v29 = vmax.f32 %v1577_v15, 0.0 }
 0x25a   : > { %v1612_v61 = vmax.f32 %v1580_v54, 0.0  ;;  %v1613_v33 = vmax.f32 %v1581_v18, 0.0  ;;  %v1620_v63 = vmax.f32 %v1588_v56, 0.0  ;;  %v1621_v36 = vmax.f32 %v1589_v21, 0.0 }
 0x25b   : > { %1630 = vst [vmem:[%s3045_s9] sm:$0xff] %v1598_v16  ;;  %v1662_v38 = vpack.c.bf16 %v1599_v25, %v1598_v16  ;;  %v1667_v1 = vpack.c.bf16 %v1609_v29, %v1608_v59  ;;  %v1496_v41 = vmul.f32 %v3590_v4, %v3396_v37  ;;  %v1497_v7 = vmul.f32 %v3590_v4, %v3404_v2 }
 0x25c   : > { %1631 = vst [vmem:[%s3045_s9 + $0x8] sm:$0xff] %v1599_v25  ;;  %v1669_v51 = vpack.c.bf16 %v1613_v33, %v1612_v61  ;;  %v1673_v44 = vpack.c.bf16 %v1621_v36, %v1620_v63  ;;  %v1506_v6 = vmul.f32 %v3590_v4, %v3460_v22  ;;  %v1507_v14 = vmul.f32 %v3590_v4, %v3466_v24 }
 0x25d   : > { %1750 = vmatmul.bf16.vlgmr.msra.gmra.mxu0 %v1662_v38  ;;  %1640 = vst [vmem:[%s3045_s9 + $0x50] sm:$0xff] %v1608_v59  ;;  %1775 = vmatmul.bf16.vlgmr.msra.gmra.mxu1 %v1667_v1  ;;  %v1532_v53 = vmul.f32 %v3588_v31, %v1496_v41  ;;  %v1533_v37 = vmul.f32 %v3588_v31, %v1497_v7 }
 0x25e   : > { %v1510_v2 = vmul.f32 %v3590_v4, %v3484_v39  ;;  %1641 = vst [vmem:[%s3045_s9 + $0x58] sm:$0xff] %v1609_v29  ;;  %1785 = vmatmul.bf16.vlgmr.msra.gmra.mxu2 %v1669_v51  ;;  %1805 = vmatmul.bf16.vlgmr.msra.gmra.mxu3 %v1673_v44  ;;  %v1542_v22 = vmul.f32 %v3588_v31, %v1506_v6 }
 0x25f   : > { %v1543_v48 = vmul.f32 %v3588_v31, %v1507_v14  ;;  %v1511_v24 = vmul.f32 %v3590_v4, %v3490_v43  ;;  %1644 = vst [vmem:[%s3045_s9 + $0x70] sm:$0xff] %v1612_v61  ;;  %v1568_v34 = vadd.f32 %v3599_v46, %v1532_v53  ;;  %v1569_v35 = vadd.f32 %v3599_v46, %v1533_v37 }
 0x260   : > { %v1546_v10 = vmul.f32 %v3588_v31, %v1510_v2  ;;  %v1518_v39 = vmul.f32 %v3590_v4, %v3532_v12  ;;  %1645 = vst [vmem:[%s3045_s9 + $0x78] sm:$0xff] %v1613_v33  ;;  %v1578_v50 = vadd.f32 %v3599_v46, %v1542_v22  ;;  %v1519_v43 = vmul.f32 %v3590_v4, %v3538_v20 }
 0x261   : > { %v1579_v19 = vadd.f32 %v3599_v46, %v1543_v48  ;;  %v1547_v9 = vmul.f32 %v3588_v31, %v1511_v24  ;;  %1652 = vst [vmem:[%s3045_s9 + $0xb0] sm:$0xff] %v1620_v63  ;;  %v1600_v17 = vmax.f32 %v1568_v34, 0.0  ;;  %v1601_v32 = vmax.f32 %v1569_v35, 0.0 }
 0x262   : > { %v1582_v27 = vadd.f32 %v3599_v46, %v1546_v10  ;;  %v1554_v12 = vmul.f32 %v3588_v31, %v1518_v39  ;;  %1653 = vst [vmem:[%s3045_s9 + $0xb8] sm:$0xff] %v1621_v36  ;;  %v1610_v30 = vmax.f32 %v1578_v50, 0.0  ;;  %v1555_v5 = vmul.f32 %v3588_v31, %v1519_v43 }
 0x263   : > { %v1611_v13 = vmax.f32 %v1579_v19, 0.0  ;;  %v1583_v62 = vadd.f32 %v3599_v46, %v1547_v9  ;;  %1632 = vst [vmem:[%s3045_s9 + $0x10] sm:$0xff] %v1600_v17  ;;  %v1498_v15 = vmul.f32 %v3590_v4, %v3408_v3  ;;  %v1663_v54 = vpack.c.bf16 %v1601_v32, %v1600_v17 }
 0x264   : > { %v1614_v52 = vmax.f32 %v1582_v27, 0.0  ;;  %v1590_v20 = vadd.f32 %v3599_v46, %v1554_v12  ;;  %1633 = vst [vmem:[%s3045_s9 + $0x18] sm:$0xff] %v1601_v32  ;;  %v1591_v56 = vadd.f32 %v3599_v46, %v1555_v5  ;;  %v1499_v21 = vmul.f32 %v3590_v4, %v3416_v47 }
 0x265   : > { %v1615_v18 = vmax.f32 %v1583_v62, 0.0  ;;  %1642 = vst [vmem:[%s3045_s9 + $0x60] sm:$0xff] %v1610_v30  ;;  %v1534_v25 = vmul.f32 %v3588_v31, %v1498_v15  ;;  %v1512_v59 = vmul.f32 %v3590_v4, %v3496_v45  ;;  %v1513_v3 = vmul.f32 %v3590_v4, %v3502_v49 }
 0x266   : > { %v1622_v16 = vmax.f32 %v1590_v20, 0.0  ;;  %1643 = vst [vmem:[%s3045_s9 + $0x68] sm:$0xff] %v1611_v13  ;;  %v1668_v29 = vpack.c.bf16 %v1611_v13, %v1610_v30  ;;  %v1623_v61 = vmax.f32 %v1591_v56, 0.0  ;;  %v1535_v33 = vmul.f32 %v3588_v31, %v1499_v21 }
 0x267   : > { %v1520_v47 = vmul.f32 %v3590_v4, %v3544_v23  ;;  %1646 = vst [vmem:[%s3045_s9 + $0x80] sm:$0xff] %v1614_v52  ;;  %v3687_v63 = vadd.f32 %v3599_v46, %v1534_v25  ;;  %v1548_v36 = vmul.f32 %v3588_v31, %v1512_v59  ;;  %v1549_v45 = vmul.f32 %v3588_v31, %v1513_v3 }
 0x268   : > { %v1521_v49 = vmul.f32 %v3590_v4, %v3550_v26  ;;  %1647 = vst [vmem:[%s3045_s9 + $0x88] sm:$0xff] %v1615_v18  ;;  %v1670_v38 = vpack.c.bf16 %v1615_v18, %v1614_v52  ;;  %v3695_v1 = vadd.f32 %v3599_v46, %v1535_v33  ;;  %v1500_v41 = vmul.f32 %v3590_v4, %v3424_v8 }
 0x269   : > { %v1556_v23 = vmul.f32 %v3588_v31, %v1520_v47  ;;  %1654 = vst [vmem:[%s3045_s9 + $0xc0] sm:$0xff] %v1622_v16  ;;  %v1602_v7 = vmax.f32 %v3687_v63, 0.0  ;;  %v3703_v51 = vadd.f32 %v3599_v46, %v1548_v36  ;;  %v3706_v26 = vadd.f32 %v3599_v46, %v1549_v45 }
 0x26a   : > { %v1557_v44 = vmul.f32 %v3588_v31, %v1521_v49  ;;  %1655 = vst [vmem:[%s3045_s9 + $0xc8] sm:$0xff] %v1623_v61  ;;  %v1603_v6 = vmax.f32 %v3695_v1, 0.0  ;;  %v1501_v8 = vmul.f32 %v3590_v4, %v3430_v57  ;;  %v1536_v53 = vmul.f32 %v3588_v31, %v1500_v41 }
 0x26b   : > { %v3712_v14 = vadd.f32 %v3599_v46, %v1556_v23  ;;  %1634 = vst [vmem:[%s3045_s9 + $0x20] sm:$0xff] %v1602_v7  ;;  %v1616_v37 = vmax.f32 %v3703_v51, 0.0  ;;  %v1617_v2 = vmax.f32 %v3706_v26, 0.0  ;;  %v1514_v48 = vmul.f32 %v3590_v4, %v3508_v55 }
 0x26c   : > { %v1593_v22 = vadd.f32 %v3599_v46, %v1557_v44  ;;  %v1674_v24 = vpack.c.bf16 %v1623_v61, %v1622_v16  ;;  %1635 = vst [vmem:[%s3045_s9 + $0x28] sm:$0xff] %v1603_v6  ;;  %v1537_v34 = vmul.f32 %v3588_v31, %v1501_v8  ;;  %v1572_v35 = vadd.f32 %v3599_v46, %v1536_v53 }
 0x26d   : > { %v1624_v57 = vmax.f32 %v3712_v14, 0.0  ;;  %1755 = vmatmul.bf16.gmra.mxu0 %v1663_v54  ;;  %1780 = vmatmul.bf16.gmra.mxu1 %v1668_v29  ;;  %1648 = vst [vmem:[%s3045_s9 + $0x90] sm:$0xff] %v1616_v37  ;;  %v1515_v39 = vmul.f32 %v3590_v4, %v3514_v58  ;;  %v1550_v19 = vmul.f32 %v3588_v31, %v1514_v48 }
 0x26e   : > { %v1625_v10 = vmax.f32 %v1593_v22, 0.0  ;;  %1790 = vmatmul.bf16.gmra.mxu2 %v1670_v38  ;;  %1810 = vmatmul.bf16.gmra.mxu3 %v1674_v24  ;;  %1649 = vst [vmem:[%s3045_s9 + $0x98] sm:$0xff] %v1617_v2  ;;  %v1573_v55 = vadd.f32 %v3599_v46, %v1537_v34  ;;  %v1604_v50 = vmax.f32 %v1572_v35, 0.0  ;;  %v1522_v43 = vmul.f32 %v3590_v4, %v3556_v28 }
 0x26f   : > { %1656 = vst [vmem:[%s3045_s9 + $0xd0] sm:$0xff] %v1624_v57  ;;  %v1551_v9 = vmul.f32 %v3588_v31, %v1515_v39  ;;  %v1523_v17 = vmul.f32 %v3590_v4, %v3562_v40  ;;  %v1586_v32 = vadd.f32 %v3599_v46, %v1550_v19  ;;  %v1502_v27 = vmul.f32 %v3590_v4, %v3436_v60 }
 0x270   : > { %1657 = vst [vmem:[%s3045_s9 + $0xd8] sm:$0xff] %v1625_v10  ;;  %v1605_v58 = vmax.f32 %v1573_v55, 0.0  ;;  %v1503_v12 = vmul.f32 %v3590_v4, %v3442_v0  ;;  %v1558_v28 = vmul.f32 %v3588_v31, %v1522_v43  ;;  %v1524_v40 = vmul.f32 %v3590_v4, %v3568_v42 }
 0x271   : > { %1636 = vst [vmem:[%s3045_s9 + $0x30] sm:$0xff] %v1604_v50  ;;  %v1587_v30 = vadd.f32 %v3599_v46, %v1551_v9  ;;  %v1559_v13 = vmul.f32 %v3588_v31, %v1523_v17  ;;  %v1618_v62 = vmax.f32 %v1586_v32, 0.0  ;;  %v1538_v5 = vmul.f32 %v3588_v31, %v1502_v27 }
 0x272   : > { %1637 = vst [vmem:[%s3045_s9 + $0x38] sm:$0xff] %v1605_v58  ;;  %v1539_v60 = vmul.f32 %v3588_v31, %v1503_v12  ;;  %v1594_v0 = vadd.f32 %v3599_v46, %v1558_v28  ;;  %v1525_v15 = vmul.f32 %v3590_v4, %v3574_v11  ;;  %v1560_v18 = vmul.f32 %v3588_v31, %v1524_v40 }
 0x273   : > { %v1619_v52 = vmax.f32 %v1587_v30, 0.0  ;;  %v1595_v20 = vadd.f32 %v3599_v46, %v1559_v13  ;;  %1650 = vst [vmem:[%s3045_s9 + $0xa0] sm:$0xff] %v1618_v62  ;;  %v1574_v42 = vadd.f32 %v3599_v46, %v1538_v5  ;;  %v1664_v61 = vpack.c.bf16 %v1603_v6, %v1602_v7 }
 0x274   : > { %v1575_v54 = vadd.f32 %v3599_v46, %v1539_v60  ;;  %v1626_v56 = vmax.f32 %v1594_v0, 0.0  ;;  %v1561_v16 = vmul.f32 %v3588_v31, %v1525_v15  ;;  %v1596_v11 = vadd.f32 %v3599_v46, %v1560_v18  ;;  %v1831_v60 = vld [vmem:[%s3031_s10] sm:$0xff]  ;;  %s1883_s10 = scalar_lea.sflag [#allocation7], %s3009_s21 }
 0x275   : > { %1651 = vst [vmem:[%s3045_s9 + $0xa8] sm:$0xff] %v1619_v52  ;;  %v1627_v21 = vmax.f32 %v1595_v20, 0.0  ;;  %v1606_v25 = vmax.f32 %v1574_v42, 0.0  ;;  %v1671_v33 = vpack.c.bf16 %v1617_v2, %v1616_v37  ;;  %v1675_v31 = vpack.c.bf16 %v1625_v10, %v1624_v57 }
 0x276   : > { %v1607_v59 = vmax.f32 %v1575_v54, 0.0  ;;  %1658 = vst [vmem:[%s3045_s9 + $0xe0] sm:$0xff] %v1626_v56  ;;  %v1597_v4 = vadd.f32 %v3599_v46, %v1561_v16  ;;  %v1628_v3 = vmax.f32 %v1596_v11, 0.0  ;;  %v1665_v47 = vpack.c.bf16 %v1605_v58, %v1604_v50 }
 0x277   : > { %1659 = vst [vmem:[%s3045_s9 + $0xe8] sm:$0xff] %v1627_v21  ;;  %v1672_v36 = vpack.c.bf16 %v1619_v52, %v1618_v62  ;;  %v1676_v46 = vpack.c.bf16 %v1627_v21, %v1626_v56  ;;  %v1849_v20 = vunpack.c.l.b16 %v1831_v60 }
 0x278   : > { %1638 = vst [vmem:[%s3045_s9 + $0x40] sm:$0xff] %v1606_v25  ;;  %v1629_v29 = vmax.f32 %v1597_v4, 0.0  ;;  %v1666_v45 = vpack.c.bf16 %v1607_v59, %v1606_v25  ;;  %v1850_v25 = vunpack.c.h.b16 %v1831_v60 }
 0x279   : > { %1639 = vst [vmem:[%s3045_s9 + $0x48] sm:$0xff] %v1607_v59  ;;  %v1851_v54 = vpack.c.b16 %v1849_v20, %v1849_v20 }
 0x27a   : > { %1660 = vst [vmem:[%s3045_s9 + $0xf0] sm:$0xff] %v1628_v3  ;;  %v1677_v49 = vpack.c.bf16 %v1629_v29, %v1628_v3  ;;  %v1852_v11 = vpack.c.b16 %v1850_v25, %v1850_v25 }
 0x27b   : > { %1661 = vst [vmem:[%s3045_s9 + $0xf8] sm:$0xff] %v1629_v29 }
 0x27d   : > { %1760 = vmatmul.bf16.gmra.mxu0 %v1664_v61 }
 0x27e   : > { %1795 = vmatmul.bf16.gmra.mxu2 %v1671_v33  ;;  %1815 = vmatmul.bf16.gmra.mxu3 %v1675_v31 }
 0x28d   : > { %1765 = vmatmul.bf16.gmra.mxu0 %v1665_v47 }
 0x28e   : > { %1800 = vmatmul.bf16.gmra.mxu2 %v1672_v36  ;;  %1820 = vmatmul.bf16.gmra.mxu3 %v1676_v46 }
 0x29d   : > { %1770 = vmatmul.bf16.gmra.mxu0 %v1666_v45 }
 0x29e   : > { %1825 = vmatmul.bf16.gmra.mxu3 %v1677_v49 }
 0x2da   : > { %v1751_v63 = vpop.f32.mrf.mxu0  ;;  %v1776_v38 = vpop.f32.mrf.mxu1 }
 0x2e1   : > { %v1786_v1 = vpop.f32.mrf.mxu2  ;;  %v1806_v23 = vpop.f32.mrf.mxu3 }
 0x2e2   : > { %v1753_v41 = vpop.f32.mrf.mxu0  ;;  %v1778_v7 = vpop.f32.mrf.mxu1 }
 0x2e3   : > { %v1832_v51 = vpack.c.bf16 %v1753_v41, %v1751_v63  ;;  %v1837_v24 = vpack.c.bf16 %v1778_v7, %v1776_v38 }
 0x2e9   : > { %v1788_v26 = vpop.f32.mrf.mxu2  ;;  %v1808_v44 = vpop.f32.mrf.mxu3 }
 0x2ea   : > { %v1839_v6 = vpack.c.bf16 %v1788_v26, %v1786_v1  ;;  %v1843_v14 = vpack.c.bf16 %v1808_v44, %v1806_v23  ;;  %v1756_v8 = vpop.f32.mrf.mxu0  ;;  %v1781_v53 = vpop.f32.mrf.mxu1 }
 0x2ec   : > { %1855 = vmatpush.bf16.msrb.mxu1 %v1839_v6 }
 0x2f1   : > { %v1811_v37 = vpop.f32.mrf.mxu3  ;;  %v1791_v39 = vpop.f32.mrf.mxu2 }
 0x2f2   : > { %v1758_v2 = vpop.f32.mrf.mxu0  ;;  %v1783_v22 = vpop.f32.mrf.mxu1 }
 0x2f3   : > { %v1838_v48 = vpack.c.bf16 %v1783_v22, %v1781_v53  ;;  %v1833_v0 = vpack.c.bf16 %v1758_v2, %v1756_v8 }
 0x2f5   : > { %1856 = vmatpush.bf16.msrb.mxu1 %v1838_v48 }
 0x2f9   : > { %v1813_v57 = vpop.f32.mrf.mxu3  ;;  %1857 = vmatpush.bf16.msrb.mxu1 %v1837_v24  ;;  %v1793_v43 = vpop.f32.mrf.mxu2 }
 0x2fa   : > { %v1761_v34 = vpop.f32.mrf.mxu0  ;;  %v1844_v18 = vpack.c.bf16 %v1813_v57, %v1811_v37  ;;  %v1840_v59 = vpack.c.bf16 %v1793_v43, %v1791_v39 }
 0x301   : > { %v1816_v35 = vpop.f32.mrf.mxu3  ;;  %v1796_v32 = vpop.f32.mrf.mxu2 }
 0x302   : > { %v1763_v10 = vpop.f32.mrf.mxu0 }
 0x303   : > { %v1834_v5 = vpack.c.bf16 %v1763_v10, %v1761_v34 }
 0x309   : > { %v1818_v55 = vpop.f32.mrf.mxu3  ;;  %v1798_v28 = vpop.f32.mrf.mxu2 }
 0x30a   : > { %v1766_v50 = vpop.f32.mrf.mxu0  ;;  %v1845_v42 = vpack.c.bf16 %v1818_v55, %v1816_v35  ;;  %v1841_v16 = vpack.c.bf16 %v1798_v28, %v1796_v32 }
 0x311   : > { %v1821_v19 = vpop.f32.mrf.mxu3  ;;  %v1801_v15 = vpop.f32.mrf.mxu2 }
 0x312   : > { %v1768_v9 = vpop.f32.mrf.mxu0 }
 0x313   : > { %v1835_v13 = vpack.c.bf16 %v1768_v9, %v1766_v50 }
 0x319   : > { %v1823_v17 = vpop.f32.mrf.mxu3  ;;  %v1803_v56 = vpop.f32.mrf.mxu2 }
 0x31a   : > { %v1771_v58 = vpop.f32.mrf.mxu0  ;;  %v1846_v52 = vpack.c.bf16 %v1823_v17, %v1821_v19  ;;  %v1842_v21 = vpack.c.bf16 %v1803_v56, %v1801_v15 }
 0x321   : > { %v1826_v27 = vpop.f32.mrf.mxu3 }
 0x322   : > { %v1773_v12 = vpop.f32.mrf.mxu0 }
 0x323   : > { %v1836_v30 = vpack.c.bf16 %v1773_v12, %v1771_v58 }
 0x325   : > { %1858 = vmatpush.bf16.msrb.mxu1 %v1836_v30 }
 0x329   : > { %v1828_v40 = vpop.f32.mrf.mxu3  ;;  %1859 = vmatpush.bf16.msrb.mxu1 %v1835_v13 }
 0x32a   : > { %v1847_v62 = vpack.c.bf16 %v1828_v40, %v1826_v27 }
 0x32c   : > { %1868 = vmatpush.bf16.msrb.mxu2 %v1847_v62 }
 0x32d   : > { %1860 = vmatpush.bf16.msrb.mxu1 %v1834_v5 }
 0x330   : > { %1869 = vmatpush.bf16.msrb.mxu2 %v1846_v52 }
 0x331   : > { %1861 = vmatpush.bf16.msrb.mxu1 %v1833_v0 }
 0x334   : > { %1870 = vmatpush.bf16.msrb.mxu2 %v1845_v42 }
 0x335   : > { %1862 = vmatpush.bf16.msrb.mxu1 %v1832_v51 }
 0x338   : > { %1871 = vmatpush.bf16.msrb.mxu2 %v1844_v18  ;;  %1863 = vmatmul.bf16.vlgmr.msrb.gmra.mxu1 %v1851_v54 }
 0x33c   : > { %1872 = vmatpush.bf16.msrb.mxu2 %v1843_v14 }
 0x340   : > { %1873 = vmatpush.bf16.msrb.mxu2 %v1842_v21 }
 0x344   : > { %1874 = vmatpush.bf16.msrb.mxu2 %v1841_v16 }
 0x348   : > { %1875 = vmatpush.bf16.msrb.mxu2 %v1840_v59 }
 0x34b   : > { %1876 = vmatmul.bf16.vlgmr.msrb.gmra.mxu2 %v1852_v11 }
 0x34c   : > { %2705 = shalt.err (!%p2702_p3)
}
 0x34d   : > { %s2816_s9 = smov 128   ;;  %s2817_s19 = smov 8  }
 0x34e   : > { %2408 = dma.vmem_to_hbm [thread:$0]  (%p2953_p5), %s1901_s20, 4096, %s1903_s28, %s1883_s10, %s2816_s9, %s2816_s9, %s2817_s19  }
 0x34f   : > { %s2180_s30 = sshll.u32 %s2798_s22, 3  ;;  %s3887_s2 = sld [smem:[#allocation35_spill]] }
 0x350   : > { %s1917_s13 = sshll.u32 %s3081_s25, 4  ;;  %s1888_s16 = scalar_lea.sflag [#allocation16], %s3009_s21  ;;  %s1918_s13 = int_to_ptr.vmem [resolvable:$true] %s1917_s13 }
 0x355   : > { %s1915_s11 = scalar_lea.hbm %s3887_s2, %s2180_s30  ;;  %s2726_s28 = scalar_lea.hbm %s3887_s2, 16 }
 0x356   : > { %s1919_s12 = sshll.u32 %s1915_s11, 4  ;;  %s1920_s12 = int_to_ptr.hbm [resolvable:$true] %s1919_s12 }
 0x357   : > { %s2720_s0 = sshra.s32 %s1920_s12, 4  ;;  %s2721_s0 = int_to_ptr.hbm [resolvable:$true] %s2720_s0 }
 0x358   : > { %s2722_s17 = scalar_lea.hbm %s2721_s0, 8  ;;  %p2727_p1 = scmp.lt.s32.totalorder %s2721_s0, %s3887_s2 }
 0x359   : > { %p2723_p7 = scmp.ne.s32.totalorder %s2721_s0, %s2722_s17  ;;  %p2728_p2 = scmp.lt.s32.totalorder %s2726_s28, %s2722_s17 }
 0x35b   : > { %p2724_p9 = pnand %p2723_p7, %p2953_p5  ;;  %p2729_p4 = por %p2728_p2, %p2727_p1 }
 0x35d   : > { %p2725_p10 = pneg %p2724_p9 }
 0x35f   : > { %p2730_p8 = pnand %p2729_p4, %p2725_p10 }
 0x3b5   : > { %v1864_v4 = vpop.f32.mrf.mxu1 }
 0x3bd   : > { %v1866_v3 = vpop.f32.mrf.mxu1 }
 0x3ce   : > { %v1877_v29 = vpop.f32.mrf.mxu2 }
 0x3cf   : > { %v1878_v61 = vadd.f32 %v1877_v29, %v1864_v4 }
 0x3d1   : > { %1881 = vst [vmem:[%s3081_s25] sm:$0xff] %v1878_v61 }
 0x3d2   : > { %2733 = shalt.err (!%p2730_p8)
}
 0x3d3   : > { %2409 = dma.vmem_to_hbm [thread:$0]  (%p2953_p5), %s1918_s13, 128, %s1920_s12, %s1888_s16  }
 0x3d6   : > { %v1879_v33 = vpop.f32.mrf.mxu2 }
 0x3d7 PF: > { %s3888_s21 = sld [smem:[#allocation24_spill]]  ;;  %p2430_p12 = pnand %p2121_p11, %p2924_p6 }
 0x3d9   : > { %p2431_p13 = pneg %p2430_p12 }
 0x3dd   : > { %s1931_s15 = sand.u32 1, %s3888_s21  }
 0x3de   : > { %s1932_s3 = scalar_lea.sflag [#allocation7], %s1931_s15 }
 0x3df   : > { %2777 = dma.done.wait (%p2431_p13), %s1932_s3, 4096  }
 0x3e0   : > { %2779 = vsyncadd (%p2431_p13), %s1932_s3, 4294963200  ;;  %s1942_s14 = scalar_lea.sflag [#allocation16], %s1931_s15 }
 0x3e1   : > { %2781 = dma.done.wait (%p2431_p13), %s1942_s14, 128  }
 0x3e2   : > { %2783 = vsyncadd (%p2431_p13), %s1942_s14, 4294967168  ;;  %s49_s24 = sadd.s32 1, %s2806_s24   ;;  %s3890_s26 = sld [smem:[#allocation25_spill]] }
 0x3e3   : > { %p46_p0 = scmp.ge.s32.totalorder %s49_s24, 4   ;;  %s3891_s21 = sld [smem:[#allocation29_spill]] }
 0x3e4   : > { %s3892_s8 = sld [smem:[#allocation27_spill]]  ;;  %s3893_s0 = smov %s2790_s1 }
 0x3e5   : > { %s3895_s22 = smov %s2802_s23 }
 0x3e6   :  { %48 = sbr.rel (!%p46_p0) target bundleno = 24 (0x18), region = 164 }
 0x3e8   : > { %s3894_s1 = smov %s3890_s26 }
 0x3ea   : > { %s3896_s23 = smov %s3892_s8 }
 0x3eb   :  { %1948 = vsyncpa [#allocation6], 1 }
 0x3ec   :  { %1950 = vsyncpa [#allocation6 + $0x1], 1 }
 0x3ed   :  { %1951 = vsyncpa [#allocation9], 1 }
 0x3ee   :  { %1953 = vsyncpa [#allocation9 + $0x1], 1 }
 0x3ef   :  { %1954 = vsyncpa [#allocation12], 1 }
 0x3f0   :  { %1956 = vsyncpa [#allocation12 + $0x1], 1 }
 0x3f1   :  { %1957 = vsyncpa [#allocation7], 1 }
 0x3f2   :  { %1959 = vsyncpa [#allocation7 + $0x1], 1 }
 0x3f3   :  { %1960 = vsyncpa [#allocation16], 1 }
 0x3f4   :  { %1962 = vsyncpa [#allocation16 + $0x1], 1 }

</bundles_post_ra>
